<compile_context>
chip_gen: v7x
topology: tpu7x:2x2x1
jax: 0.10.0
libtpu: 0.0.40
codegen_flags: <defaults>
</compile_context>

<pallas_src>
import functools

import jax
import jax.numpy as jnp
from jax.experimental import pallas as pl
from jax.experimental.pallas import tpu as pltpu


def _round_up(x, m):
    return ((x + m - 1) // m) * m


def _ffnn_kernel(x_ref, w1_ref, b1_ref, w2_ref, b2_ref, o_ref):
    # In-kernel bf16 cast of the row tile (hidden under MXU/DMA).
    xb = x_ref[...].astype(w1_ref.dtype)
    # First linear: (tm, E)bf16 @ (E, Hp)bf16 -> f32 accum; bias + ReLU in f32.
    h = jnp.dot(xb, w1_ref[...], preferred_element_type=jnp.float32)
    h = jnp.maximum(h + b1_ref[...], 0.0)          # (1, Hp) broadcasts; VPU f32
    # Dropout(p=0.2): identity in eval mode.
    # Second linear: cast h once to bf16 for the MXU, accumulate in f32.
    out = jnp.dot(h.astype(w2_ref.dtype), w2_ref[...],
                  preferred_element_type=jnp.float32)
    o_ref[...] = (out + b2_ref[...]).astype(o_ref.dtype)


def prepare_params(w1, b1, w2, b2):
    """One-time packing: pad H to a lane multiple, cast weights to bf16.

    Call once and reuse the result across ffnn_forward calls so the pad/cast
    HBM traffic is not paid on every forward pass.
    """
    E, H = w1.shape
    O = w2.shape[1]
    H_pad = _round_up(H, 128)
    w1_p = jnp.pad(w1, ((0, 0), (0, H_pad - H))).astype(jnp.bfloat16)
    b1_p = jnp.pad(b1, (0, H_pad - H)).reshape(1, H_pad).astype(jnp.float32)
    w2_p = jnp.pad(w2, ((0, H_pad - H), (0, 0))).astype(jnp.bfloat16)
    b2_p = b2.reshape(1, O).astype(jnp.float32)
    return w1_p, b1_p, w2_p, b2_p


@functools.partial(jax.jit, static_argnames=("tm", "out_dtype"))
def ffnn_forward(x, w1_p, b1_p, w2_p, b2_p, *, tm=256, out_dtype=jnp.bfloat16):
    """x: (M, E) f32; packed params from prepare_params() -> (M, O).

    out_dtype defaults to bf16 (halves the dominant output writeback); pass
    jnp.float32 for dtype-exact parity with the torch module.
    """
    M, E = x.shape
    H_pad = w1_p.shape[1]
    O = w2_p.shape[1]

    # Pad M only to a multiple of 16 (bf16 sublane packing for tiny/odd
    # batches); ragged final row tiles are handled by Pallas partial blocks.
    M_pad = _round_up(M, 16)
    x_in = x if M_pad == M else jnp.pad(x, ((0, M_pad - M), (0, 0)))

    # Row tile: clamp for small batches; for moderate/large batches keep at
    # least 2 grid steps (>=128 rows each) so v7x's 2 TensorCores both work.
    tm_eff = min(tm, M_pad)
    if M_pad >= 2 * 128:
        tm_eff = min(tm_eff, _round_up(pl.cdiv(M_pad, 2), 16))

    grid = (pl.cdiv(M_pad, tm_eff),)

    out = pl.pallas_call(
        _ffnn_kernel,
        out_shape=jax.ShapeDtypeStruct((M_pad, O), out_dtype),
        grid_spec=pltpu.PrefetchScalarGridSpec(
            num_scalar_prefetch=0,
            grid=grid,
            in_specs=[
                pl.BlockSpec((tm_eff, E), lambda i: (i, 0)),   # x row tile (f32)
                pl.BlockSpec((E, H_pad), lambda i: (0, 0)),    # W1 (resident, bf16)
                pl.BlockSpec((1, H_pad), lambda i: (0, 0)),    # b1 (f32)
                pl.BlockSpec((H_pad, O), lambda i: (0, 0)),    # W2 (resident, bf16)
                pl.BlockSpec((1, O), lambda i: (0, 0)),        # b2 (f32)
            ],
            out_specs=pl.BlockSpec((tm_eff, O), lambda i: (i, 0)),
        ),
        compiler_params=pltpu.CompilerParams(
            dimension_semantics=("parallel",),
            vmem_limit_bytes=48 * 1024 * 1024,
        ),
    )(x_in, w1_p, b1_p, w2_p, b2_p)

    # Only the padded-M path pays the slice; rows [M:M_pad] hold bias-only junk.
    return out if M_pad == M else out[:M]


def init_params(key, embeds_dim, hidden_dim=150, out_dim=768 * 3):
    """Deterministic init mirroring nn.Linear's uniform(-1/sqrt(fan_in), +)."""
    k1, k2, k3, k4 = jax.random.split(key, 4)
    bound1 = 1.0 / jnp.sqrt(embeds_dim)
    bound2 = 1.0 / jnp.sqrt(hidden_dim)
    w1 = jax.random.uniform(k1, (embeds_dim, hidden_dim), jnp.float32,
                            -bound1, bound1)
    b1 = jax.random.uniform(k2, (hidden_dim,), jnp.float32, -bound1, bound1)
    w2 = jax.random.uniform(k3, (hidden_dim, out_dim), jnp.float32,
                            -bound2, bound2)
    b2 = jax.random.uniform(k4, (out_dim,), jnp.float32, -bound2, bound2)
    return w1, b1, w2, b2


if __name__ == "__main__":
    key = jax.random.PRNGKey(0)
    kx, kp = jax.random.split(key)

    batch, embeds_dim, hidden_dim = 8, 32, 150
    x = jax.random.normal(kx, (batch, embeds_dim), jnp.float32)
    w1, b1, w2, b2 = init_params(kp, embeds_dim, hidden_dim)

    # One-time weight packing (outside the per-call path).
    packed = prepare_params(w1, b1, w2, b2)
    packed = jax.block_until_ready(packed)

    out = ffnn_forward(x, *packed)
    out = jax.block_until_ready(out)

    # Pure-JAX f32 reference (dropout is identity in eval mode). Tolerance
    # accounts for bf16 matmul operands and the bf16 output dtype.
    ref = jnp.maximum(x @ w1 + b1, 0.0) @ w2 + b2
    out_f32 = out.astype(jnp.float32)
    assert out.shape == (batch, 768 * 3)
    assert out.dtype == jnp.bfloat16
    assert jnp.allclose(out_f32, ref, atol=5e-2, rtol=5e-2), float(
        jnp.max(jnp.abs(out_f32 - ref)))

    print("KERNEL_OK")
</pallas_src>

<mosaic_0001>
module attributes {stable_mosaic.version = 11 : i64} {
  func.func @_ffnn_kernel(%arg0: i32, %arg1: memref<16x32xf32, #tpu.memory_space<vmem>>, %arg2: memref<32x256xbf16, #tpu.memory_space<vmem>>, %arg3: memref<1x256xf32, #tpu.memory_space<vmem>>, %arg4: memref<256x2304xbf16, #tpu.memory_space<vmem>>, %arg5: memref<1x2304xf32, #tpu.memory_space<vmem>>, %arg6: memref<16x2304xbf16, #tpu.memory_space<vmem>>) attributes {dimension_semantics = [#tpu.dimension_semantics<parallel>], iteration_bounds = array<i64: 1>, scalar_prefetch = 0 : i64, scratch_operands = 0 : i64, tpu.core_type = #tpu.core_type<tc>, window_params = [{transform_indices = @transform_0, window_bounds = array<i64: 16, 32>}, {pipeline_mode = #tpu.pipeline_mode<synchronous>, transform_indices = @transform_1, window_bounds = array<i64: 32, 256>}, {pipeline_mode = #tpu.pipeline_mode<synchronous>, transform_indices = @transform_2, window_bounds = array<i64: 1, 256>}, {pipeline_mode = #tpu.pipeline_mode<synchronous>, transform_indices = @transform_3, window_bounds = array<i64: 256, 2304>}, {pipeline_mode = #tpu.pipeline_mode<synchronous>, transform_indices = @transform_4, window_bounds = array<i64: 1, 2304>}, {transform_indices = @transform_5, window_bounds = array<i64: 16, 2304>}]} {
    %c0 = arith.constant 0 : index
    %c0_0 = arith.constant 0 : index
    %0 = vector.load %arg1[%c0, %c0_0] : memref<16x32xf32, #tpu.memory_space<vmem>>, vector<16x32xf32>
    %1 = arith.truncf %0 : vector<16x32xf32> to vector<16x32xbf16>
    %c0_1 = arith.constant 0 : index
    %c0_2 = arith.constant 0 : index
    %2 = vector.load %arg2[%c0_1, %c0_2] : memref<32x256xbf16, #tpu.memory_space<vmem>>, vector<32x256xbf16>
    %cst = arith.constant dense<0.000000e+00> : vector<16x256xf32>
    %3 = tpu.matmul %1, %2, %cst {dimension_numbers = #tpu.dot_dimension_numbers<[1], [0], [0], [1], [0, 0, 1, 1], [], []>} : vector<16x32xbf16>, vector<32x256xbf16>, vector<16x256xf32> -> vector<16x256xf32>
    %c0_3 = arith.constant 0 : index
    %c0_4 = arith.constant 0 : index
    %4 = vector.load %arg3[%c0_3, %c0_4] : memref<1x256xf32, #tpu.memory_space<vmem>>, vector<1x256xf32>
    %5 = vector.broadcast %4 : vector<1x256xf32> to vector<16x256xf32>
    %6 = arith.addf %3, %5 : vector<16x256xf32>
    %cst_5 = arith.constant 0.000000e+00 : f32
    %7 = vector.broadcast %cst_5 : f32 to vector<16x256xf32>
    %8 = arith.maximumf %6, %7 : vector<16x256xf32>
    %9 = arith.truncf %8 : vector<16x256xf32> to vector<16x256xbf16>
    %c0_6 = arith.constant 0 : index
    %c0_7 = arith.constant 0 : index
    %10 = vector.load %arg4[%c0_6, %c0_7] : memref<256x2304xbf16, #tpu.memory_space<vmem>>, vector<256x2304xbf16>
    %cst_8 = arith.constant dense<0.000000e+00> : vector<16x2304xf32>
    %11 = tpu.matmul %9, %10, %cst_8 {dimension_numbers = #tpu.dot_dimension_numbers<[1], [0], [0], [1], [0, 0, 1, 1], [], []>} : vector<16x256xbf16>, vector<256x2304xbf16>, vector<16x2304xf32> -> vector<16x2304xf32>
    %c0_9 = arith.constant 0 : index
    %c0_10 = arith.constant 0 : index
    %12 = vector.load %arg5[%c0_9, %c0_10] : memref<1x2304xf32, #tpu.memory_space<vmem>>, vector<1x2304xf32>
    %13 = vector.broadcast %12 : vector<1x2304xf32> to vector<16x2304xf32>
    %14 = arith.addf %11, %13 : vector<16x2304xf32>
    %15 = arith.truncf %14 : vector<16x2304xf32> to vector<16x2304xbf16>
    %c0_11 = arith.constant 0 : index
    %c0_12 = arith.constant 0 : index
    %16 = vector.load %arg6[%c0_11, %c0_12] : memref<16x2304xbf16, #tpu.memory_space<vmem>>, vector<16x2304xbf16>
    tpu.vector_store %arg6[%c0_11, %c0_12], %15 {strides = array<i32>} : memref<16x2304xbf16, #tpu.memory_space<vmem>>, vector<16x2304xbf16>,
    return
  }
  func.func @transform_0(%arg0: i32) -> (i32, i32) {
    %c0_i32 = arith.constant 0 : i32
    %c0_i32_0 = arith.constant 0 : i32
    return %arg0, %c0_i32 : i32, i32
  }
  func.func @transform_1(%arg0: i32) -> (i32, i32) {
    %c0_i32 = arith.constant 0 : i32
    %c0_i32_0 = arith.constant 0 : i32
    %c0_i32_1 = arith.constant 0 : i32
    return %c0_i32, %c0_i32_0 : i32, i32
  }
  func.func @transform_2(%arg0: i32) -> (i32, i32) {
    %c0_i32 = arith.constant 0 : i32
    %c0_i32_0 = arith.constant 0 : i32
    %c0_i32_1 = arith.constant 0 : i32
    return %c0_i32, %c0_i32_0 : i32, i32
  }
  func.func @transform_3(%arg0: i32) -> (i32, i32) {
    %c0_i32 = arith.constant 0 : i32
    %c0_i32_0 = arith.constant 0 : i32
    %c0_i32_1 = arith.constant 0 : i32
    return %c0_i32, %c0_i32_0 : i32, i32
  }
  func.func @transform_4(%arg0: i32) -> (i32, i32) {
    %c0_i32 = arith.constant 0 : i32
    %c0_i32_0 = arith.constant 0 : i32
    %c0_i32_1 = arith.constant 0 : i32
    return %c0_i32, %c0_i32_0 : i32, i32
  }
  func.func @transform_5(%arg0: i32) -> (i32, i32) {
    %c0_i32 = arith.constant 0 : i32
    %c0_i32_0 = arith.constant 0 : i32
    return %arg0, %c0_i32 : i32, i32
  }
}

</mosaic_0001>

<bundles_post_ra>
// kernel: ffnn_forward.1
= control target key start
LH: loop header
LB: loop body
LE: loop exit
PB: predicated region body
PF: predicated region fallthrough
CT: control target
= control target key end

     0   :  { %10 = vsyncpa [#allocation3], 0  ;;  %s3594_s0 = inlined_call_operand.vmem [shape: f32[16,32], index: 0, kind: input, shape index: {}]   ;;  %s3595_s1 = inlined_call_operand.hbm [shape: bf16[32,256], index: 1, kind: input, shape index: {}]   ;;  %s3596_s2 = inlined_call_operand.hbm [shape: f32[1,256], index: 2, kind: input, shape index: {}]   ;;  %s3597_s3 = inlined_call_operand.hbm [shape: bf16[256,2304], index: 3, kind: input, shape index: {}]   ;;  %s3598_s4 = inlined_call_operand.hbm [shape: f32[1,2304], index: 4, kind: input, shape index: {}]   ;;  %s3599_s5 = inlined_call_operand.vmem [shape: bf16[16,2304], index: 5, kind: output, shape index: {}]  }
   0x1   :  { %11 = vsyncpa [#allocation5], 0 }
   0x2   :  { %12 = vsyncpa [#allocation8], 0  ;;  %s3378_s18 = smov [#allocation4]   ;;  %s3379_s20 = smov [#allocation2]  }
   0x3   :  { %s33_s19 = sshll.u32 %s3378_s18, 4  ;;  %s20_s21 = sshll.u32 %s3379_s20, 4  ;;  %s34_s19 = int_to_ptr.vmem [resolvable:$true] %s33_s19  ;;  %s3417_s21 = int_to_ptr.vmem [resolvable:$true] %s20_s21 }
   0x4   :  { %s3284_s24 = scalar_lea.hbm %s3596_s2, 32 }
   0x5   :  { %p3285_p0 = scmp.ne.s32.totalorder %s3596_s2, %s3284_s24  ;;  %p3288_p1 = scmp.lt.u32.totalorder %s3284_s24, %s3596_s2 }
   0x7   :  { %p3290_p2 = pnand %p3288_p1, %p3285_p0 }
   0x9   :  { %3293 = shalt.err (!%p3290_p2)
}
   0xa   :  { %s3294_s29 = scalar_lea.vmem %s34_s19, 32  ;;  %p3299_p4 = scmp.lt.s32.totalorder %s34_s19, %s34_s19 }
   0xb   :  { %p3295_p3 = scmp.ne.s32.totalorder %s34_s19, %s3294_s29  ;;  %p3300_p5 = scmp.lt.s32.totalorder %s3294_s29, %s3294_s29 }
   0xd   :  { %p3301_p6 = por %p3300_p5, %p3299_p4 }
   0xf   :  { %p3302_p7 = pnand %p3301_p6, %p3295_p3 }
  0x11   :  { %3305 = shalt.err (!%p3302_p7)
}
  0x12   :  { %36 = dma.hbm_to_vmem [thread:$0]  %s3596_s2, 32, %s34_s19, [#allocation5]  }
  0x13   :  { %s3306_s9 = scalar_lea.hbm %s3595_s1, 512 }
  0x14   :  { %p3307_p8 = scmp.ne.s32.totalorder %s3595_s1, %s3306_s9  ;;  %p3310_p9 = scmp.lt.u32.totalorder %s3306_s9, %s3595_s1 }
  0x16   :  { %p3312_p10 = pnand %p3310_p9, %p3307_p8 }
  0x18   :  { %3315 = shalt.err (!%p3312_p10)
}
  0x19   :  { %s3316_s14 = scalar_lea.vmem %s3417_s21, 512  ;;  %p3321_p12 = scmp.lt.s32.totalorder %s3417_s21, %s3417_s21 }
  0x1a   :  { %p3317_p11 = scmp.ne.s32.totalorder %s3417_s21, %s3316_s14  ;;  %p3322_p13 = scmp.lt.s32.totalorder %s3316_s14, %s3316_s14 }
  0x1c   :  { %p3323_p0 = por %p3322_p13, %p3321_p12 }
  0x1e   :  { %p3324_p1 = pnand %p3323_p0, %p3317_p11 }
  0x20   :  { %3327 = shalt.err (!%p3324_p1)
}
  0x21   :  { %s3380_s2 = smov 128   ;;  %s3381_s15 = smov 8  }
  0x22   :  { %26 = dma.hbm_to_vmem [thread:$0]  %s3595_s1, 512, %s3417_s21, [#allocation3], %s3380_s2, %s3380_s2, %s3381_s15  }
  0x23   :  { %s3382_s18 = smov [#allocation6]   ;;  %s3328_s23 = scalar_lea.hbm %s3597_s3, 36864 }
  0x24   :  { %s42_s19 = sshll.u32 %s3382_s18, 4  ;;  %p3329_p2 = scmp.ne.s32.totalorder %s3597_s3, %s3328_s23  ;;  %s43_s19 = int_to_ptr.vmem [resolvable:$true] %s42_s19 }
  0x25   :  { %p3332_p3 = scmp.lt.u32.totalorder %s3328_s23, %s3597_s3 }
  0x27   :  { %p3334_p4 = pnand %p3332_p3, %p3329_p2 }
  0x29   :  { %3337 = shalt.err (!%p3334_p4)
}
  0x2a   :  { %s3338_s28 = scalar_lea.vmem %s43_s19, 36864  ;;  %p3343_p6 = scmp.lt.s32.totalorder %s43_s19, %s43_s19 }
  0x2b   :  { %p3339_p5 = scmp.ne.s32.totalorder %s43_s19, %s3338_s28  ;;  %p3344_p7 = scmp.lt.s32.totalorder %s3338_s28, %s3338_s28 }
  0x2d   :  { %p3345_p8 = por %p3344_p7, %p3343_p6 }
  0x2f   :  { %p3346_p9 = pnand %p3345_p8, %p3339_p5 }
  0x31   :  { %3349 = shalt.err (!%p3346_p9)
}
  0x32   :  { %s3383_s1 = smov 1152   ;;  %s3384_s21 = smov 72  }
  0x33   :  { %48 = dma.hbm_to_vmem [thread:$0]  %s3597_s3, 36864, %s43_s19, [#allocation5], %s3383_s1, %s3383_s1, %s3384_s21  }
  0x34   :  { %s3385_s6 = smov [#allocation7]   ;;  %s3350_s10 = scalar_lea.hbm %s3598_s4, 288 }
  0x35   :  { %s55_s7 = sshll.u32 %s3385_s6, 4  ;;  %p3351_p10 = scmp.ne.s32.totalorder %s3598_s4, %s3350_s10  ;;  %s56_s7 = int_to_ptr.vmem [resolvable:$true] %s55_s7 }
  0x36   :  { %p3354_p11 = scmp.lt.u32.totalorder %s3350_s10, %s3598_s4 }
  0x38   :  { %p3356_p12 = pnand %p3354_p11, %p3351_p10 }
  0x3a   :  { %3359 = shalt.err (!%p3356_p12)
}
  0x3b   :  { %s3360_s2 = scalar_lea.vmem %s56_s7, 288  ;;  %p3365_p0 = scmp.lt.s32.totalorder %s56_s7, %s56_s7 }
  0x3c   :  { %p3361_p13 = scmp.ne.s32.totalorder %s56_s7, %s3360_s2  ;;  %p3366_p1 = scmp.lt.s32.totalorder %s3360_s2, %s3360_s2 }
  0x3e   :  { %p3367_p2 = por %p3366_p1, %p3365_p0 }
  0x40   :  { %p3368_p3 = pnand %p3367_p2, %p3361_p13 }
  0x42   :  { %3371 = shalt.err (!%p3368_p3)
}
  0x43   :  { %58 = dma.hbm_to_vmem [thread:$0]  %s3598_s4, 288, %s56_s7, [#allocation8]  }
  0x44   :  { %3372 = dma.done.wait [#allocation3], 512  }
  0x45   :  { %3373 = vsyncadd [#allocation3], 4294966784 }
  0x46   :  { %3374 = dma.done.wait [#allocation5], 36896  }
  0x47   :  { %3375 = vsyncadd [#allocation5], 4294930400 }
  0x48   :  { %3376 = dma.done.wait [#allocation8], 288  }
  0x49   :  { %3377 = vsyncadd [#allocation8], 4294967008  ;;  %v3386_v0 = vmov 0   ;;  %v2846_v1 = vld [vmem:[#allocation2 + $0x4] ss:$8 sps:$4 sm:$0xff]   ;;  %vm111_vm0 = vcmask 261120  }
  0x4a   :  { %147 = vmatprep.mubr.bf16.mxu0 %v3386_v0  ;;  %v2848_v2 = vld [vmem:[#allocation2] ss:$8 sps:$4 sm:$0xff]   ;;  %115 = vmatprep.subr.bf16.mxu0 %v2846_v1  ;;  %v2849_v3 = vld [vmem:[#allocation2 + $0x14] ss:$8 sps:$4 sm:$0xff]   ;;  %v2851_v4 = vld [vmem:[#allocation2 + $0x10] ss:$8 sps:$4 sm:$0xff]  }
  0x4b   :  { %v72_v5 = vld [vmem:[%s3594_s0] sm:$0xff]  ;;  %116 = vmatpush1.bf16.msra.mxu0 %v2848_v2  ;;  %v73_v6 = vld [vmem:[%s3594_s0 + $0x8] sm:$0xff]  ;;  %v2863_v14 = vld [vmem:[#allocation6 + $0x90] ss:$72 sps:$4 sm:$0xff]  }
  0x4c   :  { %117 = vmatprep.subr.bf16.mxu0 %v2849_v3  ;;  %v2852_v7 = vld [vmem:[#allocation6 + $0x4] ss:$72 sps:$4 sm:$0xff]   ;;  %v2857_v9 = vld [vmem:[#allocation6] ss:$72 sps:$4 sm:$0xff]   ;;  %v74_v10 = vpack.c.bf16 %v73_v6, %v72_v5  ;;  %v2858_v11 = vld [vmem:[#allocation6 + $0x94] ss:$72 sps:$4 sm:$0xff]  }
  0x4d   :  { %v2856_v8 = vld [vmem:[#allocation6 + $0xc] ss:$72 sps:$4 sm:$0xff]   ;;  %1988 = vmatprep.subr.bf16.mxu1 %v2852_v7  ;;  %v2854_v12 = vld [vmem:[#allocation6 + $0x8] ss:$72 sps:$4 sm:$0xff]   ;;  %v2862_v13 = vld [vmem:[#allocation6 + $0x9c] ss:$72 sps:$4 sm:$0xff]  }
  0x4e   :  { %1989 = vmatpush1.bf16.msra.mxu1 %v2857_v9  ;;  %v2864_v15 = vld [vmem:[#allocation6 + $0x124] ss:$72 sps:$4 sm:$0xff]   ;;  %v2860_v16 = vld [vmem:[#allocation6 + $0x98] ss:$72 sps:$4 sm:$0xff]   ;;  %v2870_v19 = vld [vmem:[#allocation6 + $0x1b4] ss:$72 sps:$4 sm:$0xff]  }
  0x4f   :  { %118 = vmatpush1.bf16.msra.mxu0 %v2851_v4  ;;  %1990 = vmatprep.subr.bf16.mxu1 %v2858_v11  ;;  %v2868_v17 = vld [vmem:[#allocation6 + $0x12c] ss:$72 sps:$4 sm:$0xff]   ;;  %v2869_v18 = vld [vmem:[#allocation6 + $0x120] ss:$72 sps:$4 sm:$0xff]   ;;  %v2875_v21 = vld [vmem:[#allocation6 + $0x1b0] ss:$72 sps:$4 sm:$0xff]  }
  0x50   :  { %2031 = vmatprep.subr.bf16.mxu0 %v2856_v8  ;;  %v2866_v20 = vld [vmem:[#allocation6 + $0x128] ss:$72 sps:$4 sm:$0xff]   ;;  %v2874_v22 = vld [vmem:[#allocation6 + $0x1bc] ss:$72 sps:$4 sm:$0xff]   ;;  %v2872_v24 = vld [vmem:[#allocation6 + $0x1b8] ss:$72 sps:$4 sm:$0xff]  }
  0x51   :  { %v2876_v23 = vld [vmem:[#allocation6 + $0x244] ss:$72 sps:$4 sm:$0xff]   ;;  %v2881_v26 = vld [vmem:[#allocation6 + $0x240] ss:$72 sps:$4 sm:$0xff]   ;;  %v2882_v27 = vld [vmem:[#allocation6 + $0x2d4] ss:$72 sps:$4 sm:$0xff]  }
  0x52   :  { %2512 = vmatmul.mubr.msk.bf16.vlgmr.msra.gmra.mrb[0].mxu0 %vm111_vm0, %v74_v10  ;;  %1991 = vmatpush1.bf16.msra.mxu1 %v2863_v14  ;;  %v2880_v25 = vld [vmem:[#allocation6 + $0x24c] ss:$72 sps:$4 sm:$0xff]   ;;  %v2878_v28 = vld [vmem:[#allocation6 + $0x248] ss:$72 sps:$4 sm:$0xff]   ;;  %v2886_v30 = vld [vmem:[#allocation6 + $0x2dc] ss:$72 sps:$4 sm:$0xff]   ;;  %v81_v10 = vlaneseq }
  0x53   :  { %2032 = vmatpush1.bf16.msra.mxu0 %v2854_v12  ;;  %1992 = vmatprep.subr.bf16.mxu1 %v2864_v15  ;;  %v2887_v29 = vld [vmem:[#allocation6 + $0x2d0] ss:$72 sps:$4 sm:$0xff]   ;;  %v2888_v31 = vld [vmem:[#allocation6 + $0x364] ss:$72 sps:$4 sm:$0xff]   ;;  %v2893_v34 = vld [vmem:[#allocation6 + $0x360] ss:$72 sps:$4 sm:$0xff]  }
  0x54   :  { %2033 = vmatprep.subr.bf16.mxu0 %v2862_v13  ;;  %v2884_v32 = vld [vmem:[#allocation6 + $0x2d8] ss:$72 sps:$4 sm:$0xff]   ;;  %v2892_v33 = vld [vmem:[#allocation6 + $0x36c] ss:$72 sps:$4 sm:$0xff]   ;;  %v2890_v36 = vld [vmem:[#allocation6 + $0x368] ss:$72 sps:$4 sm:$0xff]  }
  0x55   :  { %v2894_v35 = vld [vmem:[#allocation6 + $0x3f4] ss:$72 sps:$4 sm:$0xff]   ;;  %v2899_v37 = vld [vmem:[#allocation6 + $0x3f0] ss:$72 sps:$4 sm:$0xff]   ;;  %v2900_v39 = vld [vmem:[#allocation6 + $0x484] ss:$72 sps:$4 sm:$0xff]  }
  0x56   :  { %1993 = vmatpush1.bf16.msra.mxu1 %v2869_v18  ;;  %v2898_v38 = vld [vmem:[#allocation6 + $0x3fc] ss:$72 sps:$4 sm:$0xff]   ;;  %v2896_v40 = vld [vmem:[#allocation6 + $0x3f8] ss:$72 sps:$4 sm:$0xff]   ;;  %v2904_v41 = vld [vmem:[#allocation6 + $0x48c] ss:$72 sps:$4 sm:$0xff]  }
  0x57   :  { %2034 = vmatpush1.bf16.msra.mxu0 %v2860_v16  ;;  %1994 = vmatprep.subr.bf16.mxu1 %v2870_v19  ;;  %v2905_v42 = vld [vmem:[#allocation6 + $0x480] ss:$72 sps:$4 sm:$0xff]   ;;  %v2906_v43 = vld [vmem:[#allocation6 + $0x514] ss:$72 sps:$4 sm:$0xff]   ;;  %v2911_v45 = vld [vmem:[#allocation6 + $0x510] ss:$72 sps:$4 sm:$0xff]  }
  0x58   :  { %2035 = vmatprep.subr.bf16.mxu0 %v2868_v17  ;;  %v2902_v44 = vld [vmem:[#allocation6 + $0x488] ss:$72 sps:$4 sm:$0xff]   ;;  %v2910_v46 = vld [vmem:[#allocation6 + $0x51c] ss:$72 sps:$4 sm:$0xff]   ;;  %v2908_v48 = vld [vmem:[#allocation6 + $0x518] ss:$72 sps:$4 sm:$0xff]  }
  0x59   :  { %v2912_v47 = vld [vmem:[#allocation6 + $0x5a4] ss:$72 sps:$4 sm:$0xff]   ;;  %v2917_v49 = vld [vmem:[#allocation6 + $0x5a0] ss:$72 sps:$4 sm:$0xff]   ;;  %v2918_v51 = vld [vmem:[#allocation6 + $0x634] ss:$72 sps:$4 sm:$0xff]  }
  0x5a   :  { %1995 = vmatpush1.bf16.msra.mxu1 %v2875_v21  ;;  %v2916_v50 = vld [vmem:[#allocation6 + $0x5ac] ss:$72 sps:$4 sm:$0xff]   ;;  %v2914_v52 = vld [vmem:[#allocation6 + $0x5a8] ss:$72 sps:$4 sm:$0xff]   ;;  %v2922_v54 = vld [vmem:[#allocation6 + $0x63c] ss:$72 sps:$4 sm:$0xff]  }
  0x5b   :  { %2036 = vmatpush1.bf16.msra.mxu0 %v2866_v20  ;;  %1996 = vmatprep.subr.bf16.mxu1 %v2876_v23  ;;  %v2923_v53 = vld [vmem:[#allocation6 + $0x630] ss:$72 sps:$4 sm:$0xff]   ;;  %v2924_v55 = vld [vmem:[#allocation6 + $0x6c4] ss:$72 sps:$4 sm:$0xff]   ;;  %v2929_v57 = vld [vmem:[#allocation6 + $0x6c0] ss:$72 sps:$4 sm:$0xff]  }
  0x5c   :  { %2037 = vmatprep.subr.bf16.mxu0 %v2874_v22  ;;  %v2920_v56 = vld [vmem:[#allocation6 + $0x638] ss:$72 sps:$4 sm:$0xff]   ;;  %v2928_v58 = vld [vmem:[#allocation6 + $0x6cc] ss:$72 sps:$4 sm:$0xff]   ;;  %v2926_v60 = vld [vmem:[#allocation6 + $0x6c8] ss:$72 sps:$4 sm:$0xff]  }
  0x5d   :  { %v2930_v59 = vld [vmem:[#allocation6 + $0x754] ss:$72 sps:$4 sm:$0xff]   ;;  %v2935_v61 = vld [vmem:[#allocation6 + $0x750] ss:$72 sps:$4 sm:$0xff]   ;;  %v2936_v0 = vld [vmem:[#allocation6 + $0x7e4] ss:$72 sps:$4 sm:$0xff]  }
  0x5e   :  { %1997 = vmatpush1.bf16.msra.mxu1 %v2881_v26  ;;  %v2934_v62 = vld [vmem:[#allocation6 + $0x75c] ss:$72 sps:$4 sm:$0xff]   ;;  %v2932_v63 = vld [vmem:[#allocation6 + $0x758] ss:$72 sps:$4 sm:$0xff]   ;;  %v2940_v1 = vld [vmem:[#allocation6 + $0x7ec] ss:$72 sps:$4 sm:$0xff]  }
  0x5f   :  { %2038 = vmatpush1.bf16.msra.mxu0 %v2872_v24  ;;  %1998 = vmatprep.subr.bf16.mxu1 %v2882_v27  ;;  %v2938_v2 = vld [vmem:[#allocation6 + $0x7e8] ss:$72 sps:$4 sm:$0xff]   ;;  %v2942_v4 = vld [vmem:[#allocation6 + $0x874] ss:$72 sps:$4 sm:$0xff]   ;;  %v2944_v6 = vld [vmem:[#allocation6 + $0x878] ss:$72 sps:$4 sm:$0xff]  }
  0x60   :  { %2039 = vmatprep.subr.bf16.mxu0 %v2880_v25  ;;  %v2941_v3 = vld [vmem:[#allocation6 + $0x7e0] ss:$72 sps:$4 sm:$0xff]   ;;  %v2946_v5 = vld [vmem:[#allocation6 + $0x87c] ss:$72 sps:$4 sm:$0xff]   ;;  %v2947_v7 = vld [vmem:[#allocation6 + $0x870] ss:$72 sps:$4 sm:$0xff]  }
  0x61   :  { %v2950_v8 = vld [vmem:[#allocation6 + $0x14] ss:$72 sps:$4 sm:$0xff]   ;;  %v3478_v11 = vshrl.u32 %v81_v10, 7 }
  0x62   :  { %1999 = vmatpush1.bf16.msra.mxu1 %v2887_v29  ;;  %v2953_v9 = vld [vmem:[#allocation6 + $0x1c] ss:$72 sps:$4 sm:$0xff]   ;;  %v3019_v10 = vld [vmem:[#allocation6 + $0x64c] ss:$72 sps:$4 sm:$0xff]  }
  0x63   :  { %2040 = vmatpush1.bf16.msra.mxu0 %v2878_v28  ;;  %2000 = vmatprep.subr.bf16.mxu1 %v2888_v31  ;;  %v3481_v12 = vsub.s32 0, %v3478_v11  ;;  %v79_v13 = vld [vmem:[#allocation4] sm:$0x3]  ;;  %v3484_v14 = vsub.s32 1, %v3478_v11  ;;  %v2948_v31 = vld [vmem:[#allocation6 + $0x10] ss:$72 sps:$4 sm:$0xff]  }
  0x64   :  { %2041 = vmatprep.subr.bf16.mxu0 %v2886_v30 }
  0x65   :  { %v84_v15 = vrot.slane %v79_v13, %v3481_v12  ;;  %v88_v16 = vrot.slane %v79_v13, %v3484_v14  ;;  %v3014_v13 = vld [vmem:[#allocation6 + $0x640] ss:$72 sps:$4 sm:$0xff]  }
  0x66   :  { %2001 = vmatpush1.bf16.msra.mxu1 %v2893_v34  ;;  %v2959_v34 = vld [vmem:[#allocation6 + $0xac] ss:$72 sps:$4 sm:$0xff]  }
  0x67   :  { %2042 = vmatpush1.bf16.msra.mxu0 %v2884_v32  ;;  %2002 = vmatprep.subr.bf16.mxu1 %v2894_v35  ;;  %v2951_v32 = vld [vmem:[#allocation6 + $0x18] ss:$72 sps:$4 sm:$0xff]  }
  0x68   :  { %2043 = vmatprep.subr.bf16.mxu0 %v2892_v33  ;;  %v2956_v33 = vld [vmem:[#allocation6 + $0xa4] ss:$72 sps:$4 sm:$0xff]   ;;  %v2954_v35 = vld [vmem:[#allocation6 + $0xa0] ss:$72 sps:$4 sm:$0xff]  }
  0x6a   :  { %2003 = vmatpush1.bf16.msra.mxu1 %v2899_v37  ;;  %v2962_v37 = vld [vmem:[#allocation6 + $0x134] ss:$72 sps:$4 sm:$0xff]  }
  0x6b   :  { %2044 = vmatpush1.bf16.msra.mxu0 %v2890_v36  ;;  %2004 = vmatprep.subr.bf16.mxu1 %v2900_v39  ;;  %v2957_v36 = vld [vmem:[#allocation6 + $0xa8] ss:$72 sps:$4 sm:$0xff]  }
  0x6c   :  { %2045 = vmatprep.subr.bf16.mxu0 %v2898_v38  ;;  %v2965_v38 = vld [vmem:[#allocation6 + $0x13c] ss:$72 sps:$4 sm:$0xff]   ;;  %v2960_v39 = vld [vmem:[#allocation6 + $0x130] ss:$72 sps:$4 sm:$0xff]  }
  0x6e   :  { %2005 = vmatpush1.bf16.msra.mxu1 %v2905_v42  ;;  %v2971_v42 = vld [vmem:[#allocation6 + $0x1cc] ss:$72 sps:$4 sm:$0xff]  }
  0x6f   :  { %2046 = vmatpush1.bf16.msra.mxu0 %v2896_v40  ;;  %2006 = vmatprep.subr.bf16.mxu1 %v2906_v43  ;;  %v2963_v40 = vld [vmem:[#allocation6 + $0x138] ss:$72 sps:$4 sm:$0xff]  }
  0x70   :  { %2047 = vmatprep.subr.bf16.mxu0 %v2904_v41  ;;  %v2968_v41 = vld [vmem:[#allocation6 + $0x1c4] ss:$72 sps:$4 sm:$0xff]   ;;  %v2966_v43 = vld [vmem:[#allocation6 + $0x1c0] ss:$72 sps:$4 sm:$0xff]  }
  0x72   :  { %2007 = vmatpush1.bf16.msra.mxu1 %v2911_v45  ;;  %v2974_v45 = vld [vmem:[#allocation6 + $0x254] ss:$72 sps:$4 sm:$0xff]  }
  0x73   :  { %2048 = vmatpush1.bf16.msra.mxu0 %v2902_v44  ;;  %2008 = vmatprep.subr.bf16.mxu1 %v2912_v47  ;;  %v2969_v44 = vld [vmem:[#allocation6 + $0x1c8] ss:$72 sps:$4 sm:$0xff]  }
  0x74   :  { %2049 = vmatprep.subr.bf16.mxu0 %v2910_v46  ;;  %v2977_v46 = vld [vmem:[#allocation6 + $0x25c] ss:$72 sps:$4 sm:$0xff]   ;;  %v2972_v47 = vld [vmem:[#allocation6 + $0x250] ss:$72 sps:$4 sm:$0xff]  }
  0x76   :  { %2009 = vmatpush1.bf16.msra.mxu1 %v2917_v49  ;;  %v2980_v49 = vld [vmem:[#allocation6 + $0x2e4] ss:$72 sps:$4 sm:$0xff]  }
  0x77   :  { %2050 = vmatpush1.bf16.msra.mxu0 %v2908_v48  ;;  %2010 = vmatprep.subr.bf16.mxu1 %v2918_v51  ;;  %v2975_v48 = vld [vmem:[#allocation6 + $0x258] ss:$72 sps:$4 sm:$0xff]  }
  0x78   :  { %2051 = vmatprep.subr.bf16.mxu0 %v2916_v50  ;;  %v2983_v50 = vld [vmem:[#allocation6 + $0x2ec] ss:$72 sps:$4 sm:$0xff]   ;;  %v2978_v51 = vld [vmem:[#allocation6 + $0x2e0] ss:$72 sps:$4 sm:$0xff]  }
  0x7a   :  { %2011 = vmatpush1.bf16.msra.mxu1 %v2923_v53  ;;  %v2986_v53 = vld [vmem:[#allocation6 + $0x374] ss:$72 sps:$4 sm:$0xff]  }
  0x7b   :  { %2052 = vmatpush1.bf16.msra.mxu0 %v2914_v52  ;;  %2012 = vmatprep.subr.bf16.mxu1 %v2924_v55  ;;  %v2981_v52 = vld [vmem:[#allocation6 + $0x2e8] ss:$72 sps:$4 sm:$0xff]  }
  0x7c   :  { %2053 = vmatprep.subr.bf16.mxu0 %v2922_v54  ;;  %v2989_v54 = vld [vmem:[#allocation6 + $0x37c] ss:$72 sps:$4 sm:$0xff]   ;;  %v2984_v55 = vld [vmem:[#allocation6 + $0x370] ss:$72 sps:$4 sm:$0xff]  }
  0x7e   :  { %2013 = vmatpush1.bf16.msra.mxu1 %v2929_v57  ;;  %v2992_v57 = vld [vmem:[#allocation6 + $0x404] ss:$72 sps:$4 sm:$0xff]  }
  0x7f   :  { %2054 = vmatpush1.bf16.msra.mxu0 %v2920_v56  ;;  %2014 = vmatprep.subr.bf16.mxu1 %v2930_v59  ;;  %v2987_v56 = vld [vmem:[#allocation6 + $0x378] ss:$72 sps:$4 sm:$0xff]  }
  0x80   :  { %2055 = vmatprep.subr.bf16.mxu0 %v2928_v58  ;;  %v2995_v58 = vld [vmem:[#allocation6 + $0x40c] ss:$72 sps:$4 sm:$0xff]   ;;  %v2990_v59 = vld [vmem:[#allocation6 + $0x400] ss:$72 sps:$4 sm:$0xff]  }
  0x82   :  { %2015 = vmatpush1.bf16.msra.mxu1 %v2935_v61  ;;  %v2998_v61 = vld [vmem:[#allocation6 + $0x494] ss:$72 sps:$4 sm:$0xff]  }
  0x83   :  { %2056 = vmatpush1.bf16.msra.mxu0 %v2926_v60  ;;  %2016 = vmatprep.subr.bf16.mxu1 %v2936_v0  ;;  %v2993_v60 = vld [vmem:[#allocation6 + $0x408] ss:$72 sps:$4 sm:$0xff]   ;;  %v2999_v0 = vld [vmem:[#allocation6 + $0x498] ss:$72 sps:$4 sm:$0xff]  }
  0x84   :  { %2057 = vmatprep.subr.bf16.mxu0 %v2934_v62  ;;  %v3001_v62 = vld [vmem:[#allocation6 + $0x49c] ss:$72 sps:$4 sm:$0xff]  }
  0x86   :  { %2017 = vmatpush1.bf16.msra.mxu1 %v2941_v3  ;;  %v3002_v3 = vld [vmem:[#allocation6 + $0x520] ss:$72 sps:$4 sm:$0xff]  }
  0x87   :  { %2058 = vmatpush1.bf16.msra.mxu0 %v2932_v63  ;;  %2018 = vmatprep.subr.bf16.mxu1 %v2942_v4  ;;  %v2996_v63 = vld [vmem:[#allocation6 + $0x490] ss:$72 sps:$4 sm:$0xff]  }
  0x88   :  { %2059 = vmatprep.subr.bf16.mxu0 %v2940_v1  ;;  %v3004_v1 = vld [vmem:[#allocation6 + $0x524] ss:$72 sps:$4 sm:$0xff]   ;;  %v3005_v4 = vld [vmem:[#allocation6 + $0x528] ss:$72 sps:$4 sm:$0xff]  }
  0x8a   :  { %2019 = vmatpush1.bf16.msra.mxu1 %v2947_v7  ;;  %v3008_v7 = vld [vmem:[#allocation6 + $0x5b0] ss:$72 sps:$4 sm:$0xff]  }
  0x8b   :  { %2060 = vmatpush1.bf16.msra.mxu0 %v2938_v2  ;;  %2074 = vmatprep.subr.bf16.mxu1 %v2950_v8  ;;  %v3007_v2 = vld [vmem:[#allocation6 + $0x52c] ss:$72 sps:$4 sm:$0xff]   ;;  %v3011_v8 = vld [vmem:[#allocation6 + $0x5b8] ss:$72 sps:$4 sm:$0xff]  }
  0x8c   :  { %2061 = vmatprep.subr.bf16.mxu0 %v2946_v5  ;;  %v3010_v5 = vld [vmem:[#allocation6 + $0x5b4] ss:$72 sps:$4 sm:$0xff]  }
  0x8f   :  { %2062 = vmatpush1.bf16.msra.mxu0 %v2944_v6  ;;  %v3013_v6 = vld [vmem:[#allocation6 + $0x5bc] ss:$72 sps:$4 sm:$0xff]  }
  0x90   :  { %2117 = vmatprep.subr.bf16.mxu0 %v2953_v9  ;;  %v3016_v9 = vld [vmem:[#allocation6 + $0x644] ss:$72 sps:$4 sm:$0xff]  }
 0x125   :  { %v149_v17 = vpop.f32.mrb[0].mxu0 }
 0x126   :  { %v150_v18 = vadd.f32 %v149_v17, %v84_v15  ;;  %v151_v19 = vpop.f32.mrb[1].mxu0  ;;  %v3025_v17 = vld [vmem:[#allocation6 + $0x6dc] ss:$72 sps:$4 sm:$0xff]  }
 0x127   :  { %v152_v20 = vadd.f32 %v151_v19, %v88_v16  ;;  %v153_v21 = vpop.f32.mrb[2].mxu0  ;;  %v3023_v19 = vld [vmem:[#allocation6 + $0x6d8] ss:$72 sps:$4 sm:$0xff]  }
 0x128   :  { %v154_v22 = vadd.f32 %v153_v21, %v84_v15  ;;  %v155_v23 = vpop.f32.mrb[3].mxu0  ;;  %v158_v25 = vmax.f32 %v150_v18, 0.0  ;;  %v3017_v15 = vld [vmem:[#allocation6 + $0x648] ss:$72 sps:$4 sm:$0xff]   ;;  %v3031_v21 = vld [vmem:[#allocation6 + $0x76c] ss:$72 sps:$4 sm:$0xff]  }
 0x129   :  { %v156_v24 = vadd.f32 %v155_v23, %v88_v16  ;;  %v159_v27 = vmax.f32 %v152_v20, 0.0  ;;  %v3022_v16 = vld [vmem:[#allocation6 + $0x6d4] ss:$72 sps:$4 sm:$0xff]   ;;  %v3020_v18 = vld [vmem:[#allocation6 + $0x6d0] ss:$72 sps:$4 sm:$0xff]  }
 0x12a   :  { %v160_v26 = vmax.f32 %v154_v22, 0.0  ;;  %v3028_v20 = vld [vmem:[#allocation6 + $0x764] ss:$72 sps:$4 sm:$0xff]   ;;  %v3026_v22 = vld [vmem:[#allocation6 + $0x760] ss:$72 sps:$4 sm:$0xff]  }
 0x12b   :  { %v161_v28 = vmax.f32 %v156_v24, 0.0  ;;  %v3029_v23 = vld [vmem:[#allocation6 + $0x768] ss:$72 sps:$4 sm:$0xff]   ;;  %v3034_v24 = vld [vmem:[#allocation6 + $0x7f4] ss:$72 sps:$4 sm:$0xff]  }
 0x12c   :  { %v3488_v29 = vpack.c.bf16 %v160_v26, %v158_v25  ;;  %v3037_v25 = vld [vmem:[#allocation6 + $0x7fc] ss:$72 sps:$4 sm:$0xff]   ;;  %v3032_v26 = vld [vmem:[#allocation6 + $0x7f0] ss:$72 sps:$4 sm:$0xff]  }
 0x12d   :  { %v3490_v30 = vpack.c.bf16 %v161_v28, %v159_v27  ;;  %v3035_v27 = vld [vmem:[#allocation6 + $0x7f8] ss:$72 sps:$4 sm:$0xff]   ;;  %v3040_v28 = vld [vmem:[#allocation6 + $0x884] ss:$72 sps:$4 sm:$0xff]  }
 0x12f   :  { %2020 = vmatprep.mubr.bf16.mxu1 %v3490_v30  ;;  %2063 = vmatprep.mubr.bf16.mxu0 %v3490_v30 }
 0x130   :  { %2021 = vmatmul.mubr.bf16.vlgmr.msra.gmra.mrb[0].mxu1 %v3488_v29  ;;  %2064 = vmatmul.mubr.bf16.vlgmr.msra.gmra.mrb[4].mxu0 %v3488_v29 }
 0x131   :  { %2075 = vmatpush1.bf16.msra.mxu1 %v2948_v31  ;;  %2118 = vmatpush1.bf16.msra.mxu0 %v2951_v32  ;;  %v3043_v31 = vld [vmem:[#allocation6 + $0x88c] ss:$72 sps:$4 sm:$0xff]   ;;  %v3038_v32 = vld [vmem:[#allocation6 + $0x880] ss:$72 sps:$4 sm:$0xff]  }
 0x132   :  { %2106 = vmatprep.mubr.bf16.mxu1 %v3490_v30  ;;  %2149 = vmatprep.mubr.bf16.mxu0 %v3490_v30 }
 0x133   :  { %2076 = vmatprep.subr.bf16.mxu1 %v2956_v33  ;;  %2119 = vmatprep.subr.bf16.mxu0 %v2959_v34  ;;  %v3041_v33 = vld [vmem:[#allocation6 + $0x888] ss:$72 sps:$4 sm:$0xff]   ;;  %v3046_v34 = vld [vmem:[#allocation6 + $0x24] ss:$72 sps:$4 sm:$0xff]  }
 0x135   :  { %2077 = vmatpush1.bf16.msra.mxu1 %v2954_v35  ;;  %2120 = vmatpush1.bf16.msra.mxu0 %v2957_v36  ;;  %v3049_v35 = vld [vmem:[#allocation6 + $0x2c] ss:$72 sps:$4 sm:$0xff]   ;;  %v3044_v36 = vld [vmem:[#allocation6 + $0x20] ss:$72 sps:$4 sm:$0xff]  }
 0x136   :  { %2078 = vmatprep.subr.bf16.mxu1 %v2962_v37  ;;  %2121 = vmatprep.subr.bf16.mxu0 %v2965_v38  ;;  %v3047_v37 = vld [vmem:[#allocation6 + $0x28] ss:$72 sps:$4 sm:$0xff]   ;;  %v3052_v38 = vld [vmem:[#allocation6 + $0xb4] ss:$72 sps:$4 sm:$0xff]  }
 0x139   :  { %2079 = vmatpush1.bf16.msra.mxu1 %v2960_v39  ;;  %2122 = vmatpush1.bf16.msra.mxu0 %v2963_v40  ;;  %v3055_v39 = vld [vmem:[#allocation6 + $0xbc] ss:$72 sps:$4 sm:$0xff]   ;;  %v3050_v40 = vld [vmem:[#allocation6 + $0xb0] ss:$72 sps:$4 sm:$0xff]  }
 0x13a   :  { %2080 = vmatprep.subr.bf16.mxu1 %v2968_v41  ;;  %2123 = vmatprep.subr.bf16.mxu0 %v2971_v42  ;;  %v3053_v41 = vld [vmem:[#allocation6 + $0xb8] ss:$72 sps:$4 sm:$0xff]   ;;  %v3058_v42 = vld [vmem:[#allocation6 + $0x144] ss:$72 sps:$4 sm:$0xff]  }
 0x13d   :  { %2081 = vmatpush1.bf16.msra.mxu1 %v2966_v43  ;;  %2124 = vmatpush1.bf16.msra.mxu0 %v2969_v44  ;;  %v3061_v43 = vld [vmem:[#allocation6 + $0x14c] ss:$72 sps:$4 sm:$0xff]   ;;  %v3056_v44 = vld [vmem:[#allocation6 + $0x140] ss:$72 sps:$4 sm:$0xff]  }
 0x13e   :  { %2082 = vmatprep.subr.bf16.mxu1 %v2974_v45  ;;  %2125 = vmatprep.subr.bf16.mxu0 %v2977_v46  ;;  %v3059_v45 = vld [vmem:[#allocation6 + $0x148] ss:$72 sps:$4 sm:$0xff]   ;;  %v3064_v46 = vld [vmem:[#allocation6 + $0x1d4] ss:$72 sps:$4 sm:$0xff]  }
 0x141   :  { %2083 = vmatpush1.bf16.msra.mxu1 %v2972_v47  ;;  %2126 = vmatpush1.bf16.msra.mxu0 %v2975_v48  ;;  %v3067_v47 = vld [vmem:[#allocation6 + $0x1dc] ss:$72 sps:$4 sm:$0xff]   ;;  %v3062_v48 = vld [vmem:[#allocation6 + $0x1d0] ss:$72 sps:$4 sm:$0xff]  }
 0x142   :  { %2084 = vmatprep.subr.bf16.mxu1 %v2980_v49  ;;  %2127 = vmatprep.subr.bf16.mxu0 %v2983_v50  ;;  %v3065_v49 = vld [vmem:[#allocation6 + $0x1d8] ss:$72 sps:$4 sm:$0xff]   ;;  %v3070_v50 = vld [vmem:[#allocation6 + $0x264] ss:$72 sps:$4 sm:$0xff]  }
 0x145   :  { %2085 = vmatpush1.bf16.msra.mxu1 %v2978_v51  ;;  %2128 = vmatpush1.bf16.msra.mxu0 %v2981_v52  ;;  %v3073_v51 = vld [vmem:[#allocation6 + $0x26c] ss:$72 sps:$4 sm:$0xff]   ;;  %v3068_v52 = vld [vmem:[#allocation6 + $0x260] ss:$72 sps:$4 sm:$0xff]  }
 0x146   :  { %2086 = vmatprep.subr.bf16.mxu1 %v2986_v53  ;;  %2129 = vmatprep.subr.bf16.mxu0 %v2989_v54  ;;  %v3071_v53 = vld [vmem:[#allocation6 + $0x268] ss:$72 sps:$4 sm:$0xff]   ;;  %v3076_v54 = vld [vmem:[#allocation6 + $0x2f4] ss:$72 sps:$4 sm:$0xff]  }
 0x149   :  { %2087 = vmatpush1.bf16.msra.mxu1 %v2984_v55  ;;  %2130 = vmatpush1.bf16.msra.mxu0 %v2987_v56  ;;  %v3079_v55 = vld [vmem:[#allocation6 + $0x2fc] ss:$72 sps:$4 sm:$0xff]   ;;  %v3074_v56 = vld [vmem:[#allocation6 + $0x2f0] ss:$72 sps:$4 sm:$0xff]  }
 0x14a   :  { %2088 = vmatprep.subr.bf16.mxu1 %v2992_v57  ;;  %2131 = vmatprep.subr.bf16.mxu0 %v2995_v58  ;;  %v3077_v57 = vld [vmem:[#allocation6 + $0x2f8] ss:$72 sps:$4 sm:$0xff]   ;;  %v3082_v58 = vld [vmem:[#allocation6 + $0x384] ss:$72 sps:$4 sm:$0xff]  }
 0x14d   :  { %2089 = vmatpush1.bf16.msra.mxu1 %v2990_v59  ;;  %2132 = vmatpush1.bf16.msra.mxu0 %v2993_v60  ;;  %v3085_v59 = vld [vmem:[#allocation6 + $0x38c] ss:$72 sps:$4 sm:$0xff]   ;;  %v3080_v60 = vld [vmem:[#allocation6 + $0x380] ss:$72 sps:$4 sm:$0xff]  }
 0x14e   :  { %2090 = vmatprep.subr.bf16.mxu1 %v2998_v61  ;;  %2133 = vmatprep.subr.bf16.mxu0 %v3001_v62  ;;  %v3083_v61 = vld [vmem:[#allocation6 + $0x388] ss:$72 sps:$4 sm:$0xff]   ;;  %v3088_v62 = vld [vmem:[#allocation6 + $0x414] ss:$72 sps:$4 sm:$0xff]  }
 0x151   :  { %2091 = vmatpush1.bf16.msra.mxu1 %v2996_v63  ;;  %2134 = vmatpush1.bf16.msra.mxu0 %v2999_v0  ;;  %v3091_v63 = vld [vmem:[#allocation6 + $0x41c] ss:$72 sps:$4 sm:$0xff]   ;;  %v3086_v0 = vld [vmem:[#allocation6 + $0x410] ss:$72 sps:$4 sm:$0xff]  }
 0x152   :  { %2092 = vmatprep.subr.bf16.mxu1 %v3004_v1  ;;  %2135 = vmatprep.subr.bf16.mxu0 %v3007_v2  ;;  %v3089_v1 = vld [vmem:[#allocation6 + $0x418] ss:$72 sps:$4 sm:$0xff]   ;;  %v3094_v2 = vld [vmem:[#allocation6 + $0x4a4] ss:$72 sps:$4 sm:$0xff]  }
 0x155   :  { %2093 = vmatpush1.bf16.msra.mxu1 %v3002_v3  ;;  %2136 = vmatpush1.bf16.msra.mxu0 %v3005_v4  ;;  %v3097_v3 = vld [vmem:[#allocation6 + $0x4ac] ss:$72 sps:$4 sm:$0xff]   ;;  %v3092_v4 = vld [vmem:[#allocation6 + $0x4a0] ss:$72 sps:$4 sm:$0xff]  }
 0x156   :  { %2094 = vmatprep.subr.bf16.mxu1 %v3010_v5  ;;  %2137 = vmatprep.subr.bf16.mxu0 %v3013_v6  ;;  %v3095_v5 = vld [vmem:[#allocation6 + $0x4a8] ss:$72 sps:$4 sm:$0xff]   ;;  %v3100_v6 = vld [vmem:[#allocation6 + $0x534] ss:$72 sps:$4 sm:$0xff]  }
 0x159   :  { %2095 = vmatpush1.bf16.msra.mxu1 %v3008_v7  ;;  %2138 = vmatpush1.bf16.msra.mxu0 %v3011_v8  ;;  %v3103_v7 = vld [vmem:[#allocation6 + $0x53c] ss:$72 sps:$4 sm:$0xff]   ;;  %v3098_v8 = vld [vmem:[#allocation6 + $0x530] ss:$72 sps:$4 sm:$0xff]  }
 0x15a   :  { %2096 = vmatprep.subr.bf16.mxu1 %v3016_v9  ;;  %2139 = vmatprep.subr.bf16.mxu0 %v3019_v10  ;;  %v3101_v9 = vld [vmem:[#allocation6 + $0x538] ss:$72 sps:$4 sm:$0xff]   ;;  %v3106_v10 = vld [vmem:[#allocation6 + $0x5c4] ss:$72 sps:$4 sm:$0xff]  }
 0x15d   :  { %2097 = vmatpush1.bf16.msra.mxu1 %v3014_v13  ;;  %2140 = vmatpush1.bf16.msra.mxu0 %v3017_v15  ;;  %v3109_v13 = vld [vmem:[#allocation6 + $0x5cc] ss:$72 sps:$4 sm:$0xff]   ;;  %v3104_v15 = vld [vmem:[#allocation6 + $0x5c0] ss:$72 sps:$4 sm:$0xff]  }
 0x15e   :  { %2098 = vmatprep.subr.bf16.mxu1 %v3022_v16  ;;  %2141 = vmatprep.subr.bf16.mxu0 %v3025_v17  ;;  %v3107_v16 = vld [vmem:[#allocation6 + $0x5c8] ss:$72 sps:$4 sm:$0xff]   ;;  %v3112_v17 = vld [vmem:[#allocation6 + $0x654] ss:$72 sps:$4 sm:$0xff]  }
 0x161   :  { %2099 = vmatpush1.bf16.msra.mxu1 %v3020_v18  ;;  %2142 = vmatpush1.bf16.msra.mxu0 %v3023_v19  ;;  %v3115_v18 = vld [vmem:[#allocation6 + $0x65c] ss:$72 sps:$4 sm:$0xff]   ;;  %v3110_v19 = vld [vmem:[#allocation6 + $0x650] ss:$72 sps:$4 sm:$0xff]  }
 0x162   :  { %2100 = vmatprep.subr.bf16.mxu1 %v3028_v20  ;;  %2143 = vmatprep.subr.bf16.mxu0 %v3031_v21  ;;  %v3113_v20 = vld [vmem:[#allocation6 + $0x658] ss:$72 sps:$4 sm:$0xff]   ;;  %v3118_v21 = vld [vmem:[#allocation6 + $0x6e4] ss:$72 sps:$4 sm:$0xff]  }
 0x165   :  { %2101 = vmatpush1.bf16.msra.mxu1 %v3026_v22  ;;  %2144 = vmatpush1.bf16.msra.mxu0 %v3029_v23  ;;  %v3121_v22 = vld [vmem:[#allocation6 + $0x6ec] ss:$72 sps:$4 sm:$0xff]   ;;  %v3116_v23 = vld [vmem:[#allocation6 + $0x6e0] ss:$72 sps:$4 sm:$0xff]  }
 0x166   :  { %2102 = vmatprep.subr.bf16.mxu1 %v3034_v24  ;;  %2145 = vmatprep.subr.bf16.mxu0 %v3037_v25  ;;  %v3119_v24 = vld [vmem:[#allocation6 + $0x6e8] ss:$72 sps:$4 sm:$0xff]   ;;  %v3124_v25 = vld [vmem:[#allocation6 + $0x774] ss:$72 sps:$4 sm:$0xff]  }
 0x169   :  { %2103 = vmatpush1.bf16.msra.mxu1 %v3032_v26  ;;  %2146 = vmatpush1.bf16.msra.mxu0 %v3035_v27  ;;  %v3127_v26 = vld [vmem:[#allocation6 + $0x77c] ss:$72 sps:$4 sm:$0xff]   ;;  %v3122_v27 = vld [vmem:[#allocation6 + $0x770] ss:$72 sps:$4 sm:$0xff]  }
 0x16a   :  { %2104 = vmatprep.subr.bf16.mxu1 %v3040_v28  ;;  %2147 = vmatprep.subr.bf16.mxu0 %v3043_v31  ;;  %v3125_v28 = vld [vmem:[#allocation6 + $0x778] ss:$72 sps:$4 sm:$0xff]   ;;  %v3130_v31 = vld [vmem:[#allocation6 + $0x804] ss:$72 sps:$4 sm:$0xff]  }
 0x16d   :  { %2105 = vmatpush1.bf16.msra.mxu1 %v3038_v32  ;;  %2148 = vmatpush1.bf16.msra.mxu0 %v3041_v33  ;;  %v3133_v32 = vld [vmem:[#allocation6 + $0x80c] ss:$72 sps:$4 sm:$0xff]   ;;  %v3128_v33 = vld [vmem:[#allocation6 + $0x800] ss:$72 sps:$4 sm:$0xff]  }
 0x16e   :  { %2160 = vmatprep.subr.bf16.mxu1 %v3046_v34  ;;  %2203 = vmatprep.subr.bf16.mxu0 %v3049_v35  ;;  %v3131_v34 = vld [vmem:[#allocation6 + $0x808] ss:$72 sps:$4 sm:$0xff]   ;;  %v3136_v35 = vld [vmem:[#allocation6 + $0x894] ss:$72 sps:$4 sm:$0xff]  }
 0x170   :  { %2107 = vmatmul.mubr.bf16.vlgmr.msra.gmra.mrb[4].mxu1 %v3488_v29  ;;  %2150 = vmatmul.mubr.bf16.vlgmr.msra.gmra.mrb[8].mxu0 %v3488_v29 }
 0x171   :  { %2161 = vmatpush1.bf16.msra.mxu1 %v3044_v36  ;;  %2192 = vmatprep.mubr.bf16.mxu1 %v3490_v30  ;;  %v3139_v36 = vld [vmem:[#allocation6 + $0x89c] ss:$72 sps:$4 sm:$0xff]  }
 0x172   :  { %2204 = vmatpush1.bf16.msra.mxu0 %v3047_v37  ;;  %2235 = vmatprep.mubr.bf16.mxu0 %v3490_v30  ;;  %v3134_v37 = vld [vmem:[#allocation6 + $0x890] ss:$72 sps:$4 sm:$0xff]  }
 0x173   :  { %2162 = vmatprep.subr.bf16.mxu1 %v3052_v38  ;;  %2205 = vmatprep.subr.bf16.mxu0 %v3055_v39  ;;  %v3137_v38 = vld [vmem:[#allocation6 + $0x898] ss:$72 sps:$4 sm:$0xff]   ;;  %v3142_v39 = vld [vmem:[#allocation6 + $0x34] ss:$72 sps:$4 sm:$0xff]  }
 0x175   :  { %2163 = vmatpush1.bf16.msra.mxu1 %v3050_v40  ;;  %v3145_v40 = vld [vmem:[#allocation6 + $0x3c] ss:$72 sps:$4 sm:$0xff]  }
 0x176   :  { %2206 = vmatpush1.bf16.msra.mxu0 %v3053_v41  ;;  %2164 = vmatprep.subr.bf16.mxu1 %v3058_v42  ;;  %v3140_v41 = vld [vmem:[#allocation6 + $0x30] ss:$72 sps:$4 sm:$0xff]  }
 0x177   :  { %2207 = vmatprep.subr.bf16.mxu0 %v3061_v43  ;;  %v3143_v42 = vld [vmem:[#allocation6 + $0x38] ss:$72 sps:$4 sm:$0xff]   ;;  %v3148_v43 = vld [vmem:[#allocation6 + $0xc4] ss:$72 sps:$4 sm:$0xff]  }
 0x179   :  { %2165 = vmatpush1.bf16.msra.mxu1 %v3056_v44  ;;  %v3151_v44 = vld [vmem:[#allocation6 + $0xcc] ss:$72 sps:$4 sm:$0xff]  }
 0x17a   :  { %2208 = vmatpush1.bf16.msra.mxu0 %v3059_v45  ;;  %2166 = vmatprep.subr.bf16.mxu1 %v3064_v46  ;;  %v3146_v45 = vld [vmem:[#allocation6 + $0xc0] ss:$72 sps:$4 sm:$0xff]  }
 0x17b   :  { %2209 = vmatprep.subr.bf16.mxu0 %v3067_v47  ;;  %v3149_v46 = vld [vmem:[#allocation6 + $0xc8] ss:$72 sps:$4 sm:$0xff]   ;;  %v3154_v47 = vld [vmem:[#allocation6 + $0x154] ss:$72 sps:$4 sm:$0xff]  }
 0x17d   :  { %2167 = vmatpush1.bf16.msra.mxu1 %v3062_v48  ;;  %v3157_v48 = vld [vmem:[#allocation6 + $0x15c] ss:$72 sps:$4 sm:$0xff]  }
 0x17e   :  { %2210 = vmatpush1.bf16.msra.mxu0 %v3065_v49  ;;  %2168 = vmatprep.subr.bf16.mxu1 %v3070_v50  ;;  %v3152_v49 = vld [vmem:[#allocation6 + $0x150] ss:$72 sps:$4 sm:$0xff]  }
 0x17f   :  { %2211 = vmatprep.subr.bf16.mxu0 %v3073_v51  ;;  %v3155_v50 = vld [vmem:[#allocation6 + $0x158] ss:$72 sps:$4 sm:$0xff]   ;;  %v3160_v51 = vld [vmem:[#allocation6 + $0x1e4] ss:$72 sps:$4 sm:$0xff]  }
 0x181   :  { %2169 = vmatpush1.bf16.msra.mxu1 %v3068_v52  ;;  %v3163_v52 = vld [vmem:[#allocation6 + $0x1ec] ss:$72 sps:$4 sm:$0xff]  }
 0x182   :  { %2212 = vmatpush1.bf16.msra.mxu0 %v3071_v53  ;;  %2170 = vmatprep.subr.bf16.mxu1 %v3076_v54  ;;  %v3158_v53 = vld [vmem:[#allocation6 + $0x1e0] ss:$72 sps:$4 sm:$0xff]  }
 0x183   :  { %2213 = vmatprep.subr.bf16.mxu0 %v3079_v55  ;;  %v3161_v54 = vld [vmem:[#allocation6 + $0x1e8] ss:$72 sps:$4 sm:$0xff]   ;;  %v3166_v55 = vld [vmem:[#allocation6 + $0x274] ss:$72 sps:$4 sm:$0xff]  }
 0x185   :  { %2171 = vmatpush1.bf16.msra.mxu1 %v3074_v56  ;;  %v3169_v56 = vld [vmem:[#allocation6 + $0x27c] ss:$72 sps:$4 sm:$0xff]  }
 0x186   :  { %2214 = vmatpush1.bf16.msra.mxu0 %v3077_v57  ;;  %2172 = vmatprep.subr.bf16.mxu1 %v3082_v58  ;;  %v3164_v57 = vld [vmem:[#allocation6 + $0x270] ss:$72 sps:$4 sm:$0xff]  }
 0x187   :  { %2215 = vmatprep.subr.bf16.mxu0 %v3085_v59  ;;  %v3167_v58 = vld [vmem:[#allocation6 + $0x278] ss:$72 sps:$4 sm:$0xff]   ;;  %v3172_v59 = vld [vmem:[#allocation6 + $0x304] ss:$72 sps:$4 sm:$0xff]  }
 0x189   :  { %2173 = vmatpush1.bf16.msra.mxu1 %v3080_v60  ;;  %v3175_v60 = vld [vmem:[#allocation6 + $0x30c] ss:$72 sps:$4 sm:$0xff]  }
 0x18a   :  { %2216 = vmatpush1.bf16.msra.mxu0 %v3083_v61  ;;  %2174 = vmatprep.subr.bf16.mxu1 %v3088_v62  ;;  %v3170_v61 = vld [vmem:[#allocation6 + $0x300] ss:$72 sps:$4 sm:$0xff]  }
 0x18b   :  { %2217 = vmatprep.subr.bf16.mxu0 %v3091_v63  ;;  %v3173_v62 = vld [vmem:[#allocation6 + $0x308] ss:$72 sps:$4 sm:$0xff]   ;;  %v3178_v63 = vld [vmem:[#allocation6 + $0x394] ss:$72 sps:$4 sm:$0xff]  }
 0x18d   :  { %2175 = vmatpush1.bf16.msra.mxu1 %v3086_v0  ;;  %v3181_v0 = vld [vmem:[#allocation6 + $0x39c] ss:$72 sps:$4 sm:$0xff]  }
 0x18e   :  { %2218 = vmatpush1.bf16.msra.mxu0 %v3089_v1  ;;  %2176 = vmatprep.subr.bf16.mxu1 %v3094_v2  ;;  %v3176_v1 = vld [vmem:[#allocation6 + $0x390] ss:$72 sps:$4 sm:$0xff]  }
 0x18f   :  { %2219 = vmatprep.subr.bf16.mxu0 %v3097_v3  ;;  %v3179_v2 = vld [vmem:[#allocation6 + $0x398] ss:$72 sps:$4 sm:$0xff]   ;;  %v3184_v3 = vld [vmem:[#allocation6 + $0x424] ss:$72 sps:$4 sm:$0xff]  }
 0x191   :  { %2177 = vmatpush1.bf16.msra.mxu1 %v3092_v4  ;;  %v3187_v4 = vld [vmem:[#allocation6 + $0x42c] ss:$72 sps:$4 sm:$0xff]  }
 0x192   :  { %2220 = vmatpush1.bf16.msra.mxu0 %v3095_v5  ;;  %2178 = vmatprep.subr.bf16.mxu1 %v3100_v6  ;;  %v3182_v5 = vld [vmem:[#allocation6 + $0x420] ss:$72 sps:$4 sm:$0xff]  }
 0x193   :  { %2221 = vmatprep.subr.bf16.mxu0 %v3103_v7  ;;  %v3185_v6 = vld [vmem:[#allocation6 + $0x428] ss:$72 sps:$4 sm:$0xff]   ;;  %v3190_v7 = vld [vmem:[#allocation6 + $0x4b4] ss:$72 sps:$4 sm:$0xff]  }
 0x195   :  { %2179 = vmatpush1.bf16.msra.mxu1 %v3098_v8  ;;  %v3193_v8 = vld [vmem:[#allocation6 + $0x4bc] ss:$72 sps:$4 sm:$0xff]  }
 0x196   :  { %2222 = vmatpush1.bf16.msra.mxu0 %v3101_v9  ;;  %2180 = vmatprep.subr.bf16.mxu1 %v3106_v10  ;;  %v3188_v9 = vld [vmem:[#allocation6 + $0x4b0] ss:$72 sps:$4 sm:$0xff]  }
 0x197   :  { %2223 = vmatprep.subr.bf16.mxu0 %v3109_v13  ;;  %v3191_v10 = vld [vmem:[#allocation6 + $0x4b8] ss:$72 sps:$4 sm:$0xff]   ;;  %v3196_v13 = vld [vmem:[#allocation6 + $0x544] ss:$72 sps:$4 sm:$0xff]  }
 0x199   :  { %2181 = vmatpush1.bf16.msra.mxu1 %v3104_v15  ;;  %v3199_v15 = vld [vmem:[#allocation6 + $0x54c] ss:$72 sps:$4 sm:$0xff]  }
 0x19a   :  { %2224 = vmatpush1.bf16.msra.mxu0 %v3107_v16  ;;  %2182 = vmatprep.subr.bf16.mxu1 %v3112_v17  ;;  %v3194_v16 = vld [vmem:[#allocation6 + $0x540] ss:$72 sps:$4 sm:$0xff]  }
 0x19b   :  { %2225 = vmatprep.subr.bf16.mxu0 %v3115_v18  ;;  %v3197_v17 = vld [vmem:[#allocation6 + $0x548] ss:$72 sps:$4 sm:$0xff]   ;;  %v3202_v18 = vld [vmem:[#allocation6 + $0x5d4] ss:$72 sps:$4 sm:$0xff]  }
 0x19d   :  { %2183 = vmatpush1.bf16.msra.mxu1 %v3110_v19  ;;  %v3205_v19 = vld [vmem:[#allocation6 + $0x5dc] ss:$72 sps:$4 sm:$0xff]  }
 0x19e   :  { %2226 = vmatpush1.bf16.msra.mxu0 %v3113_v20  ;;  %2184 = vmatprep.subr.bf16.mxu1 %v3118_v21  ;;  %v3200_v20 = vld [vmem:[#allocation6 + $0x5d0] ss:$72 sps:$4 sm:$0xff]  }
 0x19f   :  { %2227 = vmatprep.subr.bf16.mxu0 %v3121_v22  ;;  %v3203_v21 = vld [vmem:[#allocation6 + $0x5d8] ss:$72 sps:$4 sm:$0xff]   ;;  %v3208_v22 = vld [vmem:[#allocation6 + $0x664] ss:$72 sps:$4 sm:$0xff]  }
 0x1a1   :  { %2185 = vmatpush1.bf16.msra.mxu1 %v3116_v23  ;;  %v3211_v23 = vld [vmem:[#allocation6 + $0x66c] ss:$72 sps:$4 sm:$0xff]  }
 0x1a2   :  { %2228 = vmatpush1.bf16.msra.mxu0 %v3119_v24  ;;  %2186 = vmatprep.subr.bf16.mxu1 %v3124_v25  ;;  %v3206_v24 = vld [vmem:[#allocation6 + $0x660] ss:$72 sps:$4 sm:$0xff]  }
 0x1a3   :  { %2229 = vmatprep.subr.bf16.mxu0 %v3127_v26  ;;  %v3209_v25 = vld [vmem:[#allocation6 + $0x668] ss:$72 sps:$4 sm:$0xff]   ;;  %v3214_v26 = vld [vmem:[#allocation6 + $0x6f4] ss:$72 sps:$4 sm:$0xff]  }
 0x1a5   :  { %2187 = vmatpush1.bf16.msra.mxu1 %v3122_v27  ;;  %v3217_v27 = vld [vmem:[#allocation6 + $0x6fc] ss:$72 sps:$4 sm:$0xff]  }
 0x1a6   :  { %2230 = vmatpush1.bf16.msra.mxu0 %v3125_v28  ;;  %2188 = vmatprep.subr.bf16.mxu1 %v3130_v31  ;;  %v3212_v28 = vld [vmem:[#allocation6 + $0x6f0] ss:$72 sps:$4 sm:$0xff]  }
 0x1a7   :  { %2231 = vmatprep.subr.bf16.mxu0 %v3133_v32  ;;  %v3215_v31 = vld [vmem:[#allocation6 + $0x6f8] ss:$72 sps:$4 sm:$0xff]   ;;  %v3220_v32 = vld [vmem:[#allocation6 + $0x784] ss:$72 sps:$4 sm:$0xff]  }
 0x1a9   :  { %2189 = vmatpush1.bf16.msra.mxu1 %v3128_v33  ;;  %v3223_v33 = vld [vmem:[#allocation6 + $0x78c] ss:$72 sps:$4 sm:$0xff]  }
 0x1aa   :  { %2232 = vmatpush1.bf16.msra.mxu0 %v3131_v34  ;;  %2190 = vmatprep.subr.bf16.mxu1 %v3136_v35  ;;  %v3218_v34 = vld [vmem:[#allocation6 + $0x780] ss:$72 sps:$4 sm:$0xff]  }
 0x1ab   :  { %2233 = vmatprep.subr.bf16.mxu0 %v3139_v36  ;;  %v3221_v35 = vld [vmem:[#allocation6 + $0x788] ss:$72 sps:$4 sm:$0xff]   ;;  %v3226_v36 = vld [vmem:[#allocation6 + $0x814] ss:$72 sps:$4 sm:$0xff]  }
 0x1ad   :  { %2191 = vmatpush1.bf16.msra.mxu1 %v3134_v37  ;;  %v3229_v37 = vld [vmem:[#allocation6 + $0x81c] ss:$72 sps:$4 sm:$0xff]  }
 0x1ae   :  { %2234 = vmatpush1.bf16.msra.mxu0 %v3137_v38  ;;  %2246 = vmatprep.subr.bf16.mxu1 %v3142_v39  ;;  %v3224_v38 = vld [vmem:[#allocation6 + $0x810] ss:$72 sps:$4 sm:$0xff]  }
 0x1af   :  { %2289 = vmatprep.subr.bf16.mxu0 %v3145_v40  ;;  %v3227_v39 = vld [vmem:[#allocation6 + $0x818] ss:$72 sps:$4 sm:$0xff]   ;;  %v3232_v40 = vld [vmem:[#allocation6 + $0x8a4] ss:$72 sps:$4 sm:$0xff]  }
 0x1b0   :  { %2193 = vmatmul.mubr.bf16.vlgmr.msra.gmra.mrb[8].mxu1 %v3488_v29 }
 0x1b1   :  { %2236 = vmatmul.mubr.bf16.vlgmr.msra.gmra.mrb[12].mxu0 %v3488_v29  ;;  %2247 = vmatpush1.bf16.msra.mxu1 %v3140_v41  ;;  %v3235_v41 = vld [vmem:[#allocation6 + $0x8ac] ss:$72 sps:$4 sm:$0xff]  }
 0x1b2   :  { %2278 = vmatprep.mubr.bf16.mxu1 %v3490_v30  ;;  %2290 = vmatpush1.bf16.msra.mxu0 %v3143_v42  ;;  %v3230_v42 = vld [vmem:[#allocation6 + $0x8a0] ss:$72 sps:$4 sm:$0xff]  }
 0x1b3   :  { %2321 = vmatprep.mubr.bf16.mxu0 %v3490_v30  ;;  %2248 = vmatprep.subr.bf16.mxu1 %v3148_v43  ;;  %v3233_v43 = vld [vmem:[#allocation6 + $0x8a8] ss:$72 sps:$4 sm:$0xff]  }
 0x1b4   :  { %2291 = vmatprep.subr.bf16.mxu0 %v3151_v44  ;;  %v3238_v44 = vld [vmem:[#allocation6 + $0x44] ss:$72 sps:$4 sm:$0xff]  }
 0x1b5   :  { %2249 = vmatpush1.bf16.msra.mxu1 %v3146_v45  ;;  %v3236_v45 = vld [vmem:[#allocation6 + $0x40] ss:$72 sps:$4 sm:$0xff]  }
 0x1b6   :  { %2292 = vmatpush1.bf16.msra.mxu0 %v3149_v46  ;;  %2250 = vmatprep.subr.bf16.mxu1 %v3154_v47  ;;  %v3241_v46 = vld [vmem:[#allocation6 + $0xd4] ss:$72 sps:$4 sm:$0xff]   ;;  %v3239_v47 = vld [vmem:[#allocation6 + $0xd0] ss:$72 sps:$4 sm:$0xff]  }
 0x1b7   :  { %2293 = vmatprep.subr.bf16.mxu0 %v3157_v48  ;;  %v3244_v48 = vld [vmem:[#allocation6 + $0x164] ss:$72 sps:$4 sm:$0xff]  }
 0x1b9   :  { %2251 = vmatpush1.bf16.msra.mxu1 %v3152_v49  ;;  %v3242_v49 = vld [vmem:[#allocation6 + $0x160] ss:$72 sps:$4 sm:$0xff]  }
 0x1ba   :  { %2294 = vmatpush1.bf16.msra.mxu0 %v3155_v50  ;;  %2252 = vmatprep.subr.bf16.mxu1 %v3160_v51  ;;  %v3247_v50 = vld [vmem:[#allocation6 + $0x1f4] ss:$72 sps:$4 sm:$0xff]   ;;  %v3245_v51 = vld [vmem:[#allocation6 + $0x1f0] ss:$72 sps:$4 sm:$0xff]  }
 0x1bb   :  { %2295 = vmatprep.subr.bf16.mxu0 %v3163_v52  ;;  %v3250_v52 = vld [vmem:[#allocation6 + $0x284] ss:$72 sps:$4 sm:$0xff]  }
 0x1bd   :  { %2253 = vmatpush1.bf16.msra.mxu1 %v3158_v53  ;;  %v468_v53 = vsub.s32 2, %v3478_v11 }
 0x1be   :  { %2296 = vmatpush1.bf16.msra.mxu0 %v3161_v54  ;;  %2254 = vmatprep.subr.bf16.mxu1 %v3166_v55  ;;  %v3248_v54 = vld [vmem:[#allocation6 + $0x280] ss:$72 sps:$4 sm:$0xff]  }
 0x1bf   :  { %2297 = vmatprep.subr.bf16.mxu0 %v3169_v56  ;;  %v3510_v55 = vld [vmem:[#allocation7] sm:$0xff]  ;;  %v472_v56 = vsub.s32 3, %v3478_v11 }
 0x1c1   :  { %2255 = vmatpush1.bf16.msra.mxu1 %v3164_v57  ;;  %v461_v57 = vrot.slane %v3510_v55, %v3481_v12 }
 0x1c2   :  { %2298 = vmatpush1.bf16.msra.mxu0 %v3167_v58  ;;  %2256 = vmatprep.subr.bf16.mxu1 %v3172_v59  ;;  %v469_v58 = vrot.slane %v3510_v55, %v468_v53  ;;  %v3251_v59 = vld [vmem:[#allocation6 + $0x310] ss:$72 sps:$4 sm:$0xff]  }
 0x1c3   :  { %2299 = vmatprep.subr.bf16.mxu0 %v3175_v60  ;;  %v465_v60 = vrot.slane %v3510_v55, %v3484_v14 }
 0x1c5   :  { %2257 = vmatpush1.bf16.msra.mxu1 %v3170_v61  ;;  %v473_v61 = vrot.slane %v3510_v55, %v472_v56 }
 0x1c6   :  { %2300 = vmatpush1.bf16.msra.mxu0 %v3173_v62  ;;  %2258 = vmatprep.subr.bf16.mxu1 %v3178_v63  ;;  %v3256_v62 = vld [vmem:[#allocation6 + $0x3a4] ss:$72 sps:$4 sm:$0xff]  }
 0x1c7   :  { %2301 = vmatprep.subr.bf16.mxu0 %v3181_v0 }
 0x1c9   :  { %2259 = vmatpush1.bf16.msra.mxu1 %v3176_v1 }
 0x1ca   :  { %2302 = vmatpush1.bf16.msra.mxu0 %v3179_v2  ;;  %2260 = vmatprep.subr.bf16.mxu1 %v3184_v3 }
 0x1cb   :  { %2303 = vmatprep.subr.bf16.mxu0 %v3187_v4 }
 0x1cd   :  { %2261 = vmatpush1.bf16.msra.mxu1 %v3182_v5 }
 0x1ce   :  { %2304 = vmatpush1.bf16.msra.mxu0 %v3185_v6  ;;  %2262 = vmatprep.subr.bf16.mxu1 %v3190_v7 }
 0x1cf   :  { %2305 = vmatprep.subr.bf16.mxu0 %v3193_v8 }
 0x1d1   :  { %2263 = vmatpush1.bf16.msra.mxu1 %v3188_v9  ;;  %v3254_v9 = vld [vmem:[#allocation6 + $0x3a0] ss:$72 sps:$4 sm:$0xff]  }
 0x1d2   :  { %2306 = vmatpush1.bf16.msra.mxu0 %v3191_v10  ;;  %2264 = vmatprep.subr.bf16.mxu1 %v3196_v13 }
 0x1d3   :  { %2307 = vmatprep.subr.bf16.mxu0 %v3199_v15 }
 0x1d5   :  { %2265 = vmatpush1.bf16.msra.mxu1 %v3194_v16 }
 0x1d6   :  { %2308 = vmatpush1.bf16.msra.mxu0 %v3197_v17  ;;  %2266 = vmatprep.subr.bf16.mxu1 %v3202_v18  ;;  %v3259_v17 = vld [vmem:[#allocation6 + $0x434] ss:$72 sps:$4 sm:$0xff]  }
 0x1d7   :  { %2309 = vmatprep.subr.bf16.mxu0 %v3205_v19 }
 0x1d9   :  { %2267 = vmatpush1.bf16.msra.mxu1 %v3200_v20 }
 0x1da   :  { %2310 = vmatpush1.bf16.msra.mxu0 %v3203_v21  ;;  %2268 = vmatprep.subr.bf16.mxu1 %v3208_v22 }
 0x1db   :  { %2311 = vmatprep.subr.bf16.mxu0 %v3211_v23 }
 0x1dd   :  { %2269 = vmatpush1.bf16.msra.mxu1 %v3206_v24  ;;  %v3257_v24 = vld [vmem:[#allocation6 + $0x430] ss:$72 sps:$4 sm:$0xff]  }
 0x1de   :  { %2312 = vmatpush1.bf16.msra.mxu0 %v3209_v25  ;;  %2270 = vmatprep.subr.bf16.mxu1 %v3214_v26  ;;  %v3262_v25 = vld [vmem:[#allocation6 + $0x4c4] ss:$72 sps:$4 sm:$0xff]   ;;  %v3260_v26 = vld [vmem:[#allocation6 + $0x4c0] ss:$72 sps:$4 sm:$0xff]  }
 0x1df   :  { %2313 = vmatprep.subr.bf16.mxu0 %v3217_v27  ;;  %v3265_v27 = vld [vmem:[#allocation6 + $0x554] ss:$72 sps:$4 sm:$0xff]  }
 0x1e1   :  { %2271 = vmatpush1.bf16.msra.mxu1 %v3212_v28  ;;  %v3263_v28 = vld [vmem:[#allocation6 + $0x550] ss:$72 sps:$4 sm:$0xff]  }
 0x1e2   :  { %2314 = vmatpush1.bf16.msra.mxu0 %v3215_v31  ;;  %2272 = vmatprep.subr.bf16.mxu1 %v3220_v32  ;;  %v3268_v31 = vld [vmem:[#allocation6 + $0x5e4] ss:$72 sps:$4 sm:$0xff]   ;;  %v3266_v32 = vld [vmem:[#allocation6 + $0x5e0] ss:$72 sps:$4 sm:$0xff]  }
 0x1e3   :  { %2315 = vmatprep.subr.bf16.mxu0 %v3223_v33  ;;  %v3271_v33 = vld [vmem:[#allocation6 + $0x674] ss:$72 sps:$4 sm:$0xff]  }
 0x1e5   :  { %2273 = vmatpush1.bf16.msra.mxu1 %v3218_v34  ;;  %v3269_v34 = vld [vmem:[#allocation6 + $0x670] ss:$72 sps:$4 sm:$0xff]  }
 0x1e6   :  { %2316 = vmatpush1.bf16.msra.mxu0 %v3221_v35  ;;  %2274 = vmatprep.subr.bf16.mxu1 %v3226_v36  ;;  %v3274_v35 = vld [vmem:[#allocation6 + $0x704] ss:$72 sps:$4 sm:$0xff]   ;;  %v3272_v36 = vld [vmem:[#allocation6 + $0x700] ss:$72 sps:$4 sm:$0xff]  }
 0x1e7   :  { %2317 = vmatprep.subr.bf16.mxu0 %v3229_v37  ;;  %v3277_v37 = vld [vmem:[#allocation6 + $0x794] ss:$72 sps:$4 sm:$0xff]  }
 0x1e9   :  { %2275 = vmatpush1.bf16.msra.mxu1 %v3224_v38  ;;  %v3275_v38 = vld [vmem:[#allocation6 + $0x790] ss:$72 sps:$4 sm:$0xff]  }
 0x1ea   :  { %2318 = vmatpush1.bf16.msra.mxu0 %v3227_v39  ;;  %2276 = vmatprep.subr.bf16.mxu1 %v3232_v40  ;;  %v3280_v39 = vld [vmem:[#allocation6 + $0x824] ss:$72 sps:$4 sm:$0xff]   ;;  %v3278_v40 = vld [vmem:[#allocation6 + $0x820] ss:$72 sps:$4 sm:$0xff]  }
 0x1eb   :  { %2319 = vmatprep.subr.bf16.mxu0 %v3235_v41  ;;  %v3283_v41 = vld [vmem:[#allocation6 + $0x8b4] ss:$72 sps:$4 sm:$0xff]  }
 0x1ed   :  { %2277 = vmatpush1.bf16.msra.mxu1 %v3230_v42  ;;  %v3281_v42 = vld [vmem:[#allocation6 + $0x8b0] ss:$72 sps:$4 sm:$0xff]  }
 0x1ee   :  { %2320 = vmatpush1.bf16.msra.mxu0 %v3233_v43  ;;  %2332 = vmatprep.subr.bf16.mxu1 %v3238_v44  ;;  %v476_v43 = vsub.s32 4, %v3478_v11  ;;  %v484_v44 = vsub.s32 6, %v3478_v11 }
 0x1f0   :  { %2279 = vmatmul.mubr.bf16.vlgmr.msra.gmra.mrb[12].mxu1 %v3488_v29 }
 0x1f1   :  { %2322 = vmatmul.mubr.bf16.vlgmr.msra.gmra.mrb[16].mxu0 %v3488_v29  ;;  %2333 = vmatpush1.bf16.msra.mxu1 %v3236_v45  ;;  %v480_v45 = vsub.s32 5, %v3478_v11 }
 0x1f2   :  { %2364 = vmatprep.mubr.bf16.mxu1 %v3490_v30  ;;  %2334 = vmatprep.subr.bf16.mxu1 %v3241_v46  ;;  %v3253_v30 = vld [vmem:[#allocation6 + $0x314] ss:$72 sps:$4 sm:$0xff]   ;;  %v488_v46 = vsub.s32 7, %v3478_v11 }
 0x1f5   :  { %2335 = vmatpush1.bf16.msra.mxu1 %v3239_v47  ;;  %v477_v47 = vrot.slane %v3510_v55, %v476_v43 }
 0x1f6   :  { %2336 = vmatprep.subr.bf16.mxu1 %v3244_v48  ;;  %v485_v48 = vrot.slane %v3510_v55, %v484_v44 }
 0x1f9   :  { %2337 = vmatpush1.bf16.msra.mxu1 %v3242_v49  ;;  %v481_v49 = vrot.slane %v3510_v55, %v480_v45 }
 0x1fa   :  { %2338 = vmatprep.subr.bf16.mxu1 %v3247_v50  ;;  %v489_v50 = vrot.slane %v3510_v55, %v488_v46 }
 0x1fd   :  { %2339 = vmatpush1.bf16.msra.mxu1 %v3245_v51 }
 0x1fe   :  { %2340 = vmatprep.subr.bf16.mxu1 %v3250_v52 }
 0x201   :  { %2341 = vmatpush1.bf16.msra.mxu1 %v3248_v54 }
 0x202   :  { %2342 = vmatprep.subr.bf16.mxu1 %v3253_v30 }
 0x203   :  { %v2022_v63 = vpop.f32.mrb[0].mxu1  ;;  %v2065_v0 = vpop.f32.mrb[4].mxu0 }
 0x204   :  { %v2023_v1 = vadd.f32 %v2022_v63, %v461_v57  ;;  %v2066_v2 = vadd.f32 %v2065_v0, %v469_v58  ;;  %v2024_v3 = vpop.f32.mrb[1].mxu1  ;;  %v2067_v4 = vpop.f32.mrb[5].mxu0 }
 0x205   :  { %v2025_v5 = vadd.f32 %v2024_v3, %v465_v60  ;;  %v2068_v6 = vadd.f32 %v2067_v4, %v473_v61  ;;  %2343 = vmatpush1.bf16.msra.mxu1 %v3251_v59  ;;  %v2026_v7 = vpop.f32.mrb[2].mxu1  ;;  %v2069_v8 = vpop.f32.mrb[6].mxu0 }
 0x206   :  { %v2027_v10 = vadd.f32 %v2026_v7, %v461_v57  ;;  %v2070_v13 = vadd.f32 %v2069_v8, %v469_v58  ;;  %v2028_v15 = vpop.f32.mrb[3].mxu1  ;;  %v2071_v16 = vpop.f32.mrb[7].mxu0  ;;  %2344 = vmatprep.subr.bf16.mxu1 %v3256_v62  ;;  %v453_v7 = vld [vmem:[#allocation7 + $0x8] sm:$0xff] }
 0x207   :  { %v2819_v18 = vpack.c.bf16 %v2025_v5, %v2023_v1  ;;  %v2820_v19 = vpack.c.bf16 %v2068_v6, %v2066_v2  ;;  %v2029_v20 = vadd.f32 %v2028_v15, %v465_v60  ;;  %v2072_v21 = vadd.f32 %v2071_v16, %v473_v61 }
 0x208   :  { %v493_v8 = vrot.slane %v453_v7, %v3481_v12 }
 0x209   :  { %2483 = vst [vmem:[%s3599_s5] sm:$0xff] %v2819_v18  ;;  %2484 = vst [vmem:[%s3599_s5 + $0x8] sm:$0xff] %v2820_v19  ;;  %v2828_v22 = vpack.c.bf16 %v2029_v20, %v2027_v10  ;;  %v2829_v23 = vpack.c.bf16 %v2072_v21, %v2070_v13  ;;  %2345 = vmatpush1.bf16.msra.mxu1 %v3254_v9  ;;  %v501_v9 = vrot.slane %v453_v7, %v468_v53 }
 0x20a   :  { %2346 = vmatprep.subr.bf16.mxu1 %v3259_v17  ;;  %v497_v10 = vrot.slane %v453_v7, %v3484_v14  ;;  %v505_v13 = vrot.slane %v453_v7, %v472_v56 }
 0x20b   :  { %2492 = vst [vmem:[%s3599_s5 + $0x48] sm:$0xff] %v2828_v22  ;;  %2493 = vst [vmem:[%s3599_s5 + $0x50] sm:$0xff] %v2829_v23 }
 0x20d   :  { %2347 = vmatpush1.bf16.msra.mxu1 %v3257_v24 }
 0x20e   :  { %2348 = vmatprep.subr.bf16.mxu1 %v3262_v25 }
 0x211   :  { %2349 = vmatpush1.bf16.msra.mxu1 %v3260_v26 }
 0x212   :  { %2350 = vmatprep.subr.bf16.mxu1 %v3265_v27 }
 0x215   :  { %2351 = vmatpush1.bf16.msra.mxu1 %v3263_v28 }
 0x216   :  { %2352 = vmatprep.subr.bf16.mxu1 %v3268_v31 }
 0x219   :  { %2353 = vmatpush1.bf16.msra.mxu1 %v3266_v32 }
 0x21a   :  { %2354 = vmatprep.subr.bf16.mxu1 %v3271_v33 }
 0x21d   :  { %2355 = vmatpush1.bf16.msra.mxu1 %v3269_v34  ;;  %v509_v34 = vrot.slane %v453_v7, %v476_v43 }
 0x21e   :  { %2356 = vmatprep.subr.bf16.mxu1 %v3274_v35  ;;  %v517_v35 = vrot.slane %v453_v7, %v484_v44 }
 0x221   :  { %2357 = vmatpush1.bf16.msra.mxu1 %v3272_v36  ;;  %v513_v36 = vrot.slane %v453_v7, %v480_v45 }
 0x222   :  { %2358 = vmatprep.subr.bf16.mxu1 %v3277_v37  ;;  %v521_v37 = vrot.slane %v453_v7, %v488_v46 }
 0x225   :  { %2359 = vmatpush1.bf16.msra.mxu1 %v3275_v38 }
 0x226   :  { %2360 = vmatprep.subr.bf16.mxu1 %v3280_v39 }
 0x229   :  { %2361 = vmatpush1.bf16.msra.mxu1 %v3278_v40 }
 0x22a   :  { %2362 = vmatprep.subr.bf16.mxu1 %v3283_v41 }
 0x22d   :  { %2363 = vmatpush1.bf16.msra.mxu1 %v3281_v42 }
 0x230   :  { %2365 = vmatmul.mubr.bf16.vlgmr.msra.gmra.mrb[16].mxu1 %v3488_v29 }
 0x243   :  { %v2108_v51 = vpop.f32.mrb[4].mxu1  ;;  %v2151_v52 = vpop.f32.mrb[8].mxu0 }
 0x244   :  { %v2109_v54 = vadd.f32 %v2108_v51, %v477_v47  ;;  %v2152_v29 = vadd.f32 %v2151_v52, %v485_v48  ;;  %v2110_v30 = vpop.f32.mrb[5].mxu1  ;;  %v2153_v57 = vpop.f32.mrb[9].mxu0 }
 0x245   :  { %v2111_v58 = vadd.f32 %v2110_v30, %v481_v49  ;;  %v2154_v59 = vadd.f32 %v2153_v57, %v489_v50  ;;  %v2112_v60 = vpop.f32.mrb[6].mxu1  ;;  %v2155_v61 = vpop.f32.mrb[10].mxu0 }
 0x246   :  { %v2113_v62 = vadd.f32 %v2112_v60, %v477_v47  ;;  %v2156_v63 = vadd.f32 %v2155_v61, %v485_v48  ;;  %v2114_v0 = vpop.f32.mrb[7].mxu1  ;;  %v2157_v1 = vpop.f32.mrb[11].mxu0 }
 0x247   :  { %v2821_v2 = vpack.c.bf16 %v2111_v58, %v2109_v54  ;;  %v2822_v3 = vpack.c.bf16 %v2154_v59, %v2152_v29  ;;  %v2115_v4 = vadd.f32 %v2114_v0, %v481_v49  ;;  %v2158_v5 = vadd.f32 %v2157_v1, %v489_v50  ;;  %v454_v59 = vld [vmem:[#allocation7 + $0x10] sm:$0x3] }
 0x248   :  { %v525_v60 = vrot.slane %v454_v59, %v3481_v12  ;;  %v529_v61 = vrot.slane %v454_v59, %v3484_v14 }
 0x249   :  { %2485 = vst [vmem:[%s3599_s5 + $0x10] sm:$0xff] %v2821_v2  ;;  %2486 = vst [vmem:[%s3599_s5 + $0x18] sm:$0xff] %v2822_v3  ;;  %v2830_v55 = vpack.c.bf16 %v2115_v4, %v2113_v62  ;;  %v2831_v6 = vpack.c.bf16 %v2158_v5, %v2156_v63 }
 0x24b   :  { %2494 = vst [vmem:[%s3599_s5 + $0x58] sm:$0xff] %v2830_v55  ;;  %2495 = vst [vmem:[%s3599_s5 + $0x60] sm:$0xff] %v2831_v6 }
 0x283   :  { %v2194_v15 = vpop.f32.mrb[8].mxu1 }
 0x284   :  { %v2195_v16 = vadd.f32 %v2194_v15, %v493_v8  ;;  %v2237_v17 = vpop.f32.mrb[12].mxu0  ;;  %v2196_v18 = vpop.f32.mrb[9].mxu1 }
 0x285   :  { %v2238_v19 = vadd.f32 %v2237_v17, %v501_v9  ;;  %v2197_v20 = vadd.f32 %v2196_v18, %v497_v10  ;;  %v2239_v21 = vpop.f32.mrb[13].mxu0  ;;  %v2198_v22 = vpop.f32.mrb[10].mxu1 }
 0x286   :  { %v2240_v23 = vadd.f32 %v2239_v21, %v505_v13  ;;  %v2199_v24 = vadd.f32 %v2198_v22, %v493_v8  ;;  %v2241_v25 = vpop.f32.mrb[14].mxu0  ;;  %v2200_v26 = vpop.f32.mrb[11].mxu1 }
 0x287   :  { %v2823_v27 = vpack.c.bf16 %v2197_v20, %v2195_v16  ;;  %v2242_v28 = vadd.f32 %v2241_v25, %v501_v9  ;;  %v2201_v53 = vadd.f32 %v2200_v26, %v497_v10  ;;  %v2243_v31 = vpop.f32.mrb[15].mxu0 }
 0x288   :  { %v2824_v32 = vpack.c.bf16 %v2240_v23, %v2238_v19  ;;  %v2244_v33 = vadd.f32 %v2243_v31, %v505_v13 }
 0x289   :  { %2487 = vst [vmem:[%s3599_s5 + $0x20] sm:$0xff] %v2823_v27  ;;  %v2832_v11 = vpack.c.bf16 %v2201_v53, %v2199_v24 }
 0x28a   :  { %2488 = vst [vmem:[%s3599_s5 + $0x28] sm:$0xff] %v2824_v32  ;;  %v2833_v56 = vpack.c.bf16 %v2244_v33, %v2242_v28 }
 0x28b   :  { %2496 = vst [vmem:[%s3599_s5 + $0x68] sm:$0xff] %v2832_v11 }
 0x28c   :  { %2497 = vst [vmem:[%s3599_s5 + $0x70] sm:$0xff] %v2833_v56 }
 0x2c3   :  { %v2280_v38 = vpop.f32.mrb[12].mxu1 }
 0x2c4   :  { %v2281_v39 = vadd.f32 %v2280_v38, %v509_v34  ;;  %v2323_v40 = vpop.f32.mrb[16].mxu0  ;;  %v2282_v41 = vpop.f32.mrb[13].mxu1 }
 0x2c5   :  { %v2324_v42 = vadd.f32 %v2323_v40, %v517_v35  ;;  %v2283_v47 = vadd.f32 %v2282_v41, %v513_v36  ;;  %v2325_v48 = vpop.f32.mrb[17].mxu0  ;;  %v2284_v49 = vpop.f32.mrb[14].mxu1 }
 0x2c6   :  { %v2326_v50 = vadd.f32 %v2325_v48, %v521_v37  ;;  %v2285_v51 = vadd.f32 %v2284_v49, %v509_v34  ;;  %v2327_v52 = vpop.f32.mrb[18].mxu0  ;;  %v2286_v54 = vpop.f32.mrb[15].mxu1 }
 0x2c7   :  { %v2825_v29 = vpack.c.bf16 %v2283_v47, %v2281_v39  ;;  %v2328_v30 = vadd.f32 %v2327_v52, %v517_v35  ;;  %v2287_v57 = vadd.f32 %v2286_v54, %v513_v36  ;;  %v2329_v58 = vpop.f32.mrb[19].mxu0 }
 0x2c8   :  { %v2826_v43 = vpack.c.bf16 %v2326_v50, %v2324_v42  ;;  %v2330_v44 = vadd.f32 %v2329_v58, %v521_v37 }
 0x2c9   :  { %2489 = vst [vmem:[%s3599_s5 + $0x30] sm:$0xff] %v2825_v29  ;;  %v2834_v45 = vpack.c.bf16 %v2287_v57, %v2285_v51 }
 0x2ca   :  { %2490 = vst [vmem:[%s3599_s5 + $0x38] sm:$0xff] %v2826_v43  ;;  %v2835_v46 = vpack.c.bf16 %v2330_v44, %v2328_v30 }
 0x2cb   :  { %2498 = vst [vmem:[%s3599_s5 + $0x78] sm:$0xff] %v2834_v45 }
 0x2cc   :  { %2499 = vst [vmem:[%s3599_s5 + $0x80] sm:$0xff] %v2835_v46 }
 0x303   :  { %v2366_v62 = vpop.f32.mrb[16].mxu1 }
 0x304   :  { %v2367_v63 = vadd.f32 %v2366_v62, %v525_v60  ;;  %v2368_v0 = vpop.f32.mrb[17].mxu1 }
 0x305   :  { %v2369_v1 = vadd.f32 %v2368_v0, %v529_v61  ;;  %v2370_v2 = vpop.f32.mrb[18].mxu1 }
 0x306   :  { %v2371_v3 = vadd.f32 %v2370_v2, %v525_v60  ;;  %v2372_v4 = vpop.f32.mrb[19].mxu1 }
 0x307   :  { %v2827_v5 = vpack.c.bf16 %v2369_v1, %v2367_v63  ;;  %v2373_v55 = vadd.f32 %v2372_v4, %v529_v61 }
 0x309   :  { %2491 = vst [vmem:[%s3599_s5 + $0x40] sm:$0xff] %v2827_v5  ;;  %v2836_v6 = vpack.c.bf16 %v2373_v55, %v2371_v3 }
 0x30b   :  { %2500 = vst [vmem:[%s3599_s5 + $0x88] sm:$0xff] %v2836_v6 }
 0x30c   :  { %2505 = vsyncpa [#allocation3], 1 }
 0x30d   :  { %2506 = vsyncpa [#allocation5], 1 }
 0x30e   :  { %2507 = vsyncpa [#allocation8], 1 }

</bundles_post_ra>
